<compile_context>
chip_gen: v7x
topology: tpu7x:2x2x1
jax: 0.10.0
libtpu: 0.0.40
codegen_flags: <defaults>
</compile_context>

<pallas_src>
import functools

import jax
import jax.numpy as jnp
from jax import lax
from jax.experimental import pallas as pl
from jax.experimental.pallas import tpu as pltpu

EPS = 1e-5
ACT_DTYPE = jnp.bfloat16          # activations / folded conv weights in HBM


def _vmem_capacity_bytes():
    try:
        info = pltpu.get_tpu_info()
        for name in ("vmem_capacity_bytes", "vmem_bytes", "vmem_size_bytes"):
            v = getattr(info, name, None)
            if v:
                return int(v)
    except Exception:
        pass
    return 64 * 1024 * 1024        # conservative default (v7x physical VMEM)


_VMEM_PHYS = _vmem_capacity_bytes()
# Explicit scoped-VMEM limit for every kernel (v5e's default is only 16 MiB).
VMEM_LIMIT = int(min(_VMEM_PHYS * 3 // 4, 100 * 1024 * 1024))
TILE_BUDGET = VMEM_LIMIT // 8      # rough per-kernel activation-tile budget


def _cdiv(a, b):
    return -(-a // b)


def _pick_rows(m, bytes_per_row, *, align=128):
    """Byte-sized row tile: multiple of `align`, >=2 grid steps when possible."""
    if m <= align:
        return m
    rows = max(align, (TILE_BUDGET // max(1, bytes_per_row)) // align * align)
    if m >= 2 * align:             # keep >=2 grid steps (v7x has 2 TensorCores)
        rows = min(rows, align * max(1, m // (2 * align)))
    return int(min(rows, (m // align) * align))


def _fold_bn(gamma, beta, mean, var):
    scale = gamma / jnp.sqrt(var + EPS)
    return scale, beta - mean * scale


# ----------------------------------------------------------------------------
# Kernel 1: 1x1 conv1 (BN1 scale folded into weight) + shift + relu
# ----------------------------------------------------------------------------
def _conv1_kernel(x_ref, w_ref, b_ref, o_ref):
    y = jnp.dot(x_ref[...], w_ref[...], preferred_element_type=jnp.float32)
    y = jnp.maximum(y + b_ref[...], 0.0)
    o_ref[...] = y.astype(o_ref.dtype)


def conv1_bn_relu(x2d, w1, b1, tm):
    m, cin = x2d.shape
    width = w1.shape[1]
    return pl.pallas_call(
        _conv1_kernel,
        out_shape=jax.ShapeDtypeStruct((m, width), ACT_DTYPE),
        grid=(_cdiv(m, tm),),
        in_specs=[
            pl.BlockSpec((tm, cin), lambda i: (i, 0)),
            pl.BlockSpec((cin, width), lambda i: (0, 0)),
            pl.BlockSpec((1, width), lambda i: (0, 0)),
        ],
        out_specs=pl.BlockSpec((tm, width), lambda i: (i, 0)),
        compiler_params=pltpu.CompilerParams(
            dimension_semantics=("parallel",), vmem_limit_bytes=VMEM_LIMIT),
    )(x2d, w1, b1)


# ----------------------------------------------------------------------------
# Kernel 2: grouped 3x3 conv + bn2 + relu, row-tiled, in-kernel halo & stride,
#           fused with the SE global-average-pool accumulation.
# ----------------------------------------------------------------------------
def _grouped_conv_kernel(y1_ref, w_ref, b_ref, y2_ref, pool_ref, xpad_ref,
                         *, H, W, Hout, Wout, stride, TH, n_chunks, CH, inv_hw):
    t = pl.program_id(1)

    # Stage the current image into a zero-bordered f32 VMEM buffer once per
    # image (replaces the former wrapper-side jnp.pad HBM round-trip) and
    # reset the SE pool accumulator.
    @pl.when(t == 0)
    def _():
        xpad_ref[...] = jnp.zeros_like(xpad_ref)
        xpad_ref[pl.ds(1, H), pl.ds(1, W), :] = y1_ref[...].astype(xpad_ref.dtype)
        pool_ref[...] = jnp.zeros_like(pool_ref)

    m_rows = TH * Wout
    r0 = t * (TH * stride)          # first padded-row index touched by tap kh=0

    # Rows of a ragged last tile must not contribute to the SE average pool.
    row_valid = (t * TH + lax.broadcasted_iota(jnp.int32, (TH, 1, 1), 0)) < Hout

    for c in range(n_chunks):
        lo, hi = c * CH, (c + 1) * CH
        acc = jnp.zeros((m_rows, CH), jnp.float32)
        # 9 taps, each an (m_rows, CH) x (CH, CH) bf16 MXU matmul accumulated
        # in f32 registers (tile-sized -- no full-image VMEM RMW passes).
        for kh in range(3):
            for kw in range(3):
                if stride == 1:
                    patch = xpad_ref[pl.ds(r0 + kh, TH), pl.ds(kw, Wout), lo:hi]
                else:
                    raw = xpad_ref[pl.ds(r0 + kh, TH * stride),
                                   pl.ds(kw, Wout * stride), lo:hi]
                    raw = raw.reshape(TH, stride, Wout * stride, CH)[:, 0]
                    patch = raw.reshape(TH, Wout, stride, CH)[:, :, 0]
                patch = patch.reshape(m_rows, CH).astype(jnp.bfloat16)
                acc = acc + jnp.dot(patch, w_ref[c, kh * 3 + kw],
                                    preferred_element_type=jnp.float32)
        y = jnp.maximum(acc + b_ref[:, lo:hi], 0.0)
        y3d = y.reshape(TH, Wout, CH)
        y2_ref[:, :, lo:hi] = y3d.astype(y2_ref.dtype)
        pool_ref[:, lo:hi] += (
            jnp.sum(jnp.where(row_valid, y3d, 0.0), axis=(0, 1))[None, :] * inv_hw)


def grouped_conv_bn_relu_pool(y1, w2, b2, *, stride, Hout, Wout, TH):
    N, H, W, width = y1.shape
    n_chunks, ntaps, CH, _ = w2.shape
    n_t = _cdiv(Hout, TH)
    hp = n_t * TH * stride + 2      # padded scratch covers ragged over-reads
    wp = Wout * stride + 2
    kern = functools.partial(
        _grouped_conv_kernel, H=H, W=W, Hout=Hout, Wout=Wout, stride=stride,
        TH=TH, n_chunks=n_chunks, CH=CH, inv_hw=1.0 / float(Hout * Wout))
    return pl.pallas_call(
        kern,
        out_shape=(jax.ShapeDtypeStruct((N, Hout, Wout, width), ACT_DTYPE),
                   jax.ShapeDtypeStruct((N, 1, width), jnp.float32)),
        grid=(N, n_t),
        in_specs=[
            pl.BlockSpec((None, H, W, width), lambda n, t: (n, 0, 0, 0)),
            pl.BlockSpec((n_chunks, ntaps, CH, CH), lambda n, t: (0, 0, 0, 0)),
            pl.BlockSpec((1, width), lambda n, t: (0, 0)),
        ],
        out_specs=(
            pl.BlockSpec((None, TH, Wout, width), lambda n, t: (n, t, 0, 0)),
            pl.BlockSpec((None, 1, width), lambda n, t: (n, 0, 0)),
        ),
        scratch_shapes=[pltpu.VMEM((hp, wp, width), jnp.float32)],
        compiler_params=pltpu.CompilerParams(
            dimension_semantics=("parallel", "arbitrary"),
            vmem_limit_bytes=VMEM_LIMIT),
    )(y1, w2, b2)


# ----------------------------------------------------------------------------
# Kernel 3: conv3+bn3 (recomputed, never stored to HBM) + SE scale +
#           residual (identity or projection conv+bn) + relu, fused.
# ----------------------------------------------------------------------------
def _fused_out_proj_kernel(y2_ref, xs_ref, s_ref, w3_ref, b3_ref, wd_ref,
                           bd_ref, o_ref):
    y3 = jnp.dot(y2_ref[...], w3_ref[...],
                 preferred_element_type=jnp.float32) + b3_ref[...]
    proj = jnp.dot(xs_ref[...], wd_ref[...],
                   preferred_element_type=jnp.float32) + bd_ref[...]
    o_ref[...] = jnp.maximum(y3 * s_ref[...] + proj, 0.0).astype(o_ref.dtype)


def _fused_out_id_kernel(y2_ref, xs_ref, s_ref, w3_ref, b3_ref, o_ref):
    y3 = jnp.dot(y2_ref[...], w3_ref[...],
                 preferred_element_type=jnp.float32) + b3_ref[...]
    out = jnp.maximum(y3 * s_ref[...] + xs_ref[...].astype(jnp.float32), 0.0)
    o_ref[...] = out.astype(o_ref.dtype)


def fused_output(y2m, xsm, se_scale, w3, b3, wd=None, bd=None, *, tm):
    N, HW2, width = y2m.shape
    cin = xsm.shape[-1]
    cout = w3.shape[1]
    in_specs = [
        pl.BlockSpec((None, tm, width), lambda n, m: (n, m, 0)),
        pl.BlockSpec((None, tm, cin), lambda n, m: (n, m, 0)),
        pl.BlockSpec((None, 1, cout), lambda n, m: (n, 0, 0)),
        pl.BlockSpec((width, cout), lambda n, m: (0, 0)),
        pl.BlockSpec((1, cout), lambda n, m: (0, 0)),
    ]
    args = [y2m, xsm, se_scale, w3, b3]
    if wd is not None:
        kern = _fused_out_proj_kernel
        in_specs += [pl.BlockSpec((cin, cout), lambda n, m: (0, 0)),
                     pl.BlockSpec((1, cout), lambda n, m: (0, 0))]
        args += [wd, bd]
    else:
        kern = _fused_out_id_kernel
    return pl.pallas_call(
        kern,
        out_shape=jax.ShapeDtypeStruct((N, HW2, cout), ACT_DTYPE),
        grid=(N, _cdiv(HW2, tm)),
        in_specs=in_specs,
        out_specs=pl.BlockSpec((None, tm, cout), lambda n, m: (n, m, 0)),
        compiler_params=pltpu.CompilerParams(
            dimension_semantics=("parallel", "parallel"),
            vmem_limit_bytes=VMEM_LIMIT),
    )(*args)


# ----------------------------------------------------------------------------
# One-time parameter preparation (BN folding, grouped-weight block-diagonal
# construction, dtype casts) -- called once, OUTSIDE the per-call jit path.
# ----------------------------------------------------------------------------
def _build_grouped_weight(conv2_w, s2, C, D, gpc):
    """(n_chunks, 9, CH, CH) per-tap weights, block-diagonal within a chunk."""
    n_chunks = C // gpc
    CH = gpc * D
    wg = conv2_w.reshape(C, D, D, 3, 3)                         # (g,dout,din,kh,kw)
    wt = jnp.transpose(wg, (0, 3, 4, 2, 1)).reshape(C, 9, D, D)  # (g,k,din,dout)
    wt = wt.reshape(n_chunks, gpc, 9, D, D)
    eye = jnp.eye(gpc, dtype=wt.dtype)
    w = jnp.einsum('cgkij,gh->ckgihj', wt, eye)                 # (c,k,g,i,h,j)
    w = w.reshape(n_chunks, 9, CH, CH)
    return (w * s2.reshape(n_chunks, 1, 1, CH)).astype(ACT_DTYPE)


def prepare_params(p, cfg):
    C = cfg['cardinality']
    width = p['conv1_w'].shape[0]
    D = width // C
    s1, b1 = _fold_bn(*p['bn1'])
    s2, b2 = _fold_bn(*p['bn2'])
    s3, b3 = _fold_bn(*p['bn3'])
    gpc = min(C, max(1, 128 // D))        # groups per chunk: ~128 lanes / chunk
    while C % gpc:
        gpc -= 1
    w3_f32 = p['conv3_w'][:, :, 0, 0].T * s3[None, :]
    prep = {
        'w1': (p['conv1_w'][:, :, 0, 0].T * s1[None, :]).astype(ACT_DTYPE),
        'b1': b1.reshape(1, -1),
        'w2': _build_grouped_weight(p['conv2_w'], s2, C, D, gpc),
        'b2': b2.reshape(1, -1),
        'w3': w3_f32.astype(ACT_DTYPE),
        'w3_f32': w3_f32,
        'b3': b3.reshape(1, -1),
        'fc1_w': p['fc1_w'][:, :, 0, 0].T, 'fc1_b': p['fc1_b'],
        'fc2_w': p['fc2_w'][:, :, 0, 0].T, 'fc2_b': p['fc2_b'],
    }
    if cfg['has_proj']:
        sd, bd = _fold_bn(*p['bn_ds'])
        prep['wd'] = (p['ds_w'][:, :, 0, 0].T * sd[None, :]).astype(ACT_DTYPE)
        prep['bd'] = bd.reshape(1, -1)
    return prep


# ----------------------------------------------------------------------------
# Forward wrapper
# ----------------------------------------------------------------------------
def se_resnext_bottleneck_pallas(x_nchw, prep, cfg):
    stride = cfg['stride']
    N, Cin, H, W = x_nchw.shape
    width = prep['w1'].shape[1]
    Cout = prep['w3'].shape[1]
    Hout = (H + 2 - 3) // stride + 1
    Wout = (W + 2 - 3) // stride + 1
    HW2 = Hout * Wout

    # NCHW -> NHWC + bf16 cast in one fused XLA pass.
    # TODO(synk): run the surrounding graph in NHWC to drop boundary transposes.
    x = jnp.transpose(x_nchw, (0, 2, 3, 1)).astype(ACT_DTYPE)

    # conv1 + bn1 + relu
    tm1 = _pick_rows(N * H * W, (Cin + width) * 2)
    y1 = conv1_bn_relu(x.reshape(N * H * W, Cin), prep['w1'], prep['b1'], tm1)
    y1 = y1.reshape(N, H, W, width)

    # grouped conv2 + bn2 + relu, fused with SE average-pool accumulation.
    # Row tile keeps the f32 accumulator (TH*Wout, CH) register-friendly.
    CH = prep['w2'].shape[2]
    th_acc = max(1, (128 * 1024) // max(1, Wout * CH * 4))
    TH = max(1, min(Hout, th_acc, 8))
    y2, mean_y2 = grouped_conv_bn_relu_pool(
        y1, prep['w2'], prep['b2'], stride=stride, Hout=Hout, Wout=Wout, TH=TH)

    # SE excitation (tiny per-image matmuls) in plain JAX / f32.
    pooled_y3 = mean_y2[:, 0, :] @ prep['w3_f32'] + prep['b3']      # mean(y3)
    h = jnp.maximum(pooled_y3 @ prep['fc1_w'] + prep['fc1_b'], 0.0)
    se = jax.nn.sigmoid(h @ prep['fc2_w'] + prep['fc2_b'])
    se_scale = se.reshape(N, 1, Cout)

    # conv3+bn3 recomputed & fused with SE scale + residual/projection + relu.
    y2m = y2.reshape(N, HW2, width)
    xs = x[:, ::stride, ::stride, :].reshape(N, HW2, Cin)
    tm4 = _pick_rows(HW2, (width + Cin + 2 * Cout) * 2)
    if cfg['has_proj']:
        out = fused_output(y2m, xs, se_scale, prep['w3'], prep['b3'],
                           prep['wd'], prep['bd'], tm=tm4)
    else:
        assert stride == 1 and Cin == Cout, \
            "identity residual requires stride==1 and input_chn==output_chn"
        out = fused_output(y2m, xs, se_scale, prep['w3'], prep['b3'], tm=tm4)

    out = out.reshape(N, Hout, Wout, Cout)
    # NHWC -> NCHW + f32 cast at the module boundary (one fused XLA pass).
    return jnp.transpose(out, (0, 3, 1, 2)).astype(jnp.float32)


# ----------------------------------------------------------------------------
# Pure-JAX (XLA) reference with PyTorch NCHW semantics, for verification
# ----------------------------------------------------------------------------
def reference_forward(x_nchw, p, cfg):
    dn = ('NCHW', 'OIHW', 'NCHW')
    hi = lax.Precision.HIGHEST

    def bn(y, gamma, beta, mean, var):
        sc = gamma / jnp.sqrt(var + EPS)
        return (y - mean[None, :, None, None]) * sc[None, :, None, None] \
            + beta[None, :, None, None]

    stride = cfg['stride']
    y = lax.conv_general_dilated(x_nchw, p['conv1_w'], (1, 1), 'VALID',
                                 dimension_numbers=dn, precision=hi)
    y = jax.nn.relu(bn(y, *p['bn1']))
    y = lax.conv_general_dilated(y, p['conv2_w'], (stride, stride), ((1, 1), (1, 1)),
                                 dimension_numbers=dn,
                                 feature_group_count=cfg['cardinality'], precision=hi)
    y = jax.nn.relu(bn(y, *p['bn2']))
    y = lax.conv_general_dilated(y, p['conv3_w'], (1, 1), 'VALID',
                                 dimension_numbers=dn, precision=hi)
    y = bn(y, *p['bn3'])
    s = jnp.mean(y, axis=(2, 3), keepdims=True)
    s = lax.conv_general_dilated(s, p['fc1_w'], (1, 1), 'VALID',
                                 dimension_numbers=dn, precision=hi) \
        + p['fc1_b'][None, :, None, None]
    s = jax.nn.relu(s)
    s = lax.conv_general_dilated(s, p['fc2_w'], (1, 1), 'VALID',
                                 dimension_numbers=dn, precision=hi) \
        + p['fc2_b'][None, :, None, None]
    s = jax.nn.sigmoid(s)
    y = y * s
    proj = x_nchw
    if cfg['has_proj']:
        proj = lax.conv_general_dilated(x_nchw, p['ds_w'], (stride, stride), 'VALID',
                                        dimension_numbers=dn, precision=hi)
        proj = bn(proj, *p['bn_ds'])
    return jax.nn.relu(y + proj)


# ----------------------------------------------------------------------------
# Deterministic parameter init (shapes follow SEResNeXtBottleneck.__init__)
# ----------------------------------------------------------------------------
def init_params(key, input_chn, cardinality, width, output_chn, reduction, has_proj):
    D = width // cardinality
    mid = output_chn // reduction
    it = iter(jax.random.split(key, 16))

    def conv_w(k, o, i, kh, kw):
        return 0.1 * jax.random.normal(k, (o, i, kh, kw), jnp.float32)

    def bn_p(k, c):
        k1, k2, k3, k4 = jax.random.split(k, 4)
        gamma = 1.0 + 0.1 * jax.random.normal(k1, (c,), jnp.float32)
        beta = 0.1 * jax.random.normal(k2, (c,), jnp.float32)
        mean = 0.1 * jax.random.normal(k3, (c,), jnp.float32)
        var = 0.5 + 0.5 * jnp.abs(jax.random.normal(k4, (c,), jnp.float32))
        return (gamma, beta, mean, var)

    p = {
        'conv1_w': conv_w(next(it), width, input_chn, 1, 1),
        'bn1': bn_p(next(it), width),
        'conv2_w': conv_w(next(it), width, D, 3, 3),          # grouped: (C*D, D, 3, 3)
        'bn2': bn_p(next(it), width),
        'conv3_w': conv_w(next(it), output_chn, width, 1, 1),
        'bn3': bn_p(next(it), output_chn),
        'fc1_w': conv_w(next(it), mid, output_chn, 1, 1),
        'fc1_b': 0.1 * jax.random.normal(next(it), (mid,), jnp.float32),
        'fc2_w': conv_w(next(it), output_chn, mid, 1, 1),
        'fc2_b': 0.1 * jax.random.normal(next(it), (output_chn,), jnp.float32),
    }
    if has_proj:
        p['ds_w'] = conv_w(next(it), output_chn, input_chn, 1, 1)
        p['bn_ds'] = bn_p(next(it), output_chn)
    return p


if __name__ == "__main__":
    key = jax.random.PRNGKey(0)
    k1, k2, k3, k4 = jax.random.split(key, 4)
    TOL = 4e-2          # bf16 activations/weights vs f32 HIGHEST reference

    # Config 1: projection branch
    cfg1 = dict(input_chn=16, cardinality=4, width=32, output_chn=32,
                reduction=16, stride=1, has_proj=True)
    x1 = jax.random.normal(k1, (2, cfg1['input_chn'], 16, 16), jnp.float32)
    p1 = init_params(k2, cfg1['input_chn'], cfg1['cardinality'], cfg1['width'],
                     cfg1['output_chn'], cfg1['reduction'], cfg1['has_proj'])
    prep1 = prepare_params(p1, cfg1)                 # one-time folding, outside jit
    fwd1 = jax.jit(functools.partial(se_resnext_bottleneck_pallas, cfg=cfg1))
    out1 = jax.block_until_ready(fwd1(x1, prep1))
    ref1 = jax.block_until_ready(reference_forward(x1, p1, cfg1))
    assert out1.shape == ref1.shape, (out1.shape, ref1.shape)
    err1 = float(jnp.max(jnp.abs(out1 - ref1)))
    assert err1 < TOL, f"cfg1 max abs err too large: {err1}"

    # Config 2: identity residual (no projection)
    cfg2 = dict(input_chn=32, cardinality=8, width=32, output_chn=32,
                reduction=8, stride=1, has_proj=False)
    x2 = jax.random.normal(k3, (2, cfg2['input_chn'], 16, 16), jnp.float32)
    p2 = init_params(k4, cfg2['input_chn'], cfg2['cardinality'], cfg2['width'],
                     cfg2['output_chn'], cfg2['reduction'], cfg2['has_proj'])
    prep2 = prepare_params(p2, cfg2)
    fwd2 = jax.jit(functools.partial(se_resnext_bottleneck_pallas, cfg=cfg2))
    out2 = jax.block_until_ready(fwd2(x2, prep2))
    ref2 = jax.block_until_ready(reference_forward(x2, p2, cfg2))
    assert out2.shape == ref2.shape, (out2.shape, ref2.shape)
    err2 = float(jnp.max(jnp.abs(out2 - ref2)))
    assert err2 < TOL, f"cfg2 max abs err too large: {err2}"

    print("KERNEL_OK")
</pallas_src>

<mosaic_0001>
module attributes {stable_mosaic.version = 11 : i64} {
  func.func @_conv1_kernel(%arg0: i32, %arg1: memref<256x16xbf16, #tpu.memory_space<vmem>>, %arg2: memref<16x32xbf16, #tpu.memory_space<vmem>>, %arg3: memref<1x32xf32, #tpu.memory_space<vmem>>, %arg4: memref<256x32xbf16, #tpu.memory_space<vmem>>) attributes {dimension_semantics = [#tpu.dimension_semantics<parallel>], iteration_bounds = array<i64: 2>, scalar_prefetch = 0 : i64, scratch_operands = 0 : i64, tpu.core_type = #tpu.core_type<tc>, window_params = [{transform_indices = @transform_0, window_bounds = array<i64: 256, 16>}, {pipeline_mode = #tpu.pipeline_mode<synchronous>, transform_indices = @transform_1, window_bounds = array<i64: 16, 32>}, {pipeline_mode = #tpu.pipeline_mode<synchronous>, transform_indices = @transform_2, window_bounds = array<i64: 1, 32>}, {transform_indices = @transform_3, window_bounds = array<i64: 256, 32>}]} {
    %c0 = arith.constant 0 : index
    %c0_0 = arith.constant 0 : index
    %0 = vector.load %arg1[%c0, %c0_0] : memref<256x16xbf16, #tpu.memory_space<vmem>>, vector<256x16xbf16>
    %c0_1 = arith.constant 0 : index
    %c0_2 = arith.constant 0 : index
    %1 = vector.load %arg2[%c0_1, %c0_2] : memref<16x32xbf16, #tpu.memory_space<vmem>>, vector<16x32xbf16>
    %cst = arith.constant dense<0.000000e+00> : vector<256x32xf32>
    %2 = tpu.matmul %0, %1, %cst {dimension_numbers = #tpu.dot_dimension_numbers<[1], [0], [0], [1], [0, 0, 1, 1], [], []>} : vector<256x16xbf16>, vector<16x32xbf16>, vector<256x32xf32> -> vector<256x32xf32>
    %c0_3 = arith.constant 0 : index
    %c0_4 = arith.constant 0 : index
    %3 = vector.load %arg3[%c0_3, %c0_4] : memref<1x32xf32, #tpu.memory_space<vmem>>, vector<1x32xf32>
    %4 = vector.broadcast %3 : vector<1x32xf32> to vector<256x32xf32>
    %5 = arith.addf %2, %4 : vector<256x32xf32>
    %cst_5 = arith.constant 0.000000e+00 : f32
    %6 = vector.broadcast %cst_5 : f32 to vector<256x32xf32>
    %7 = arith.maximumf %5, %6 : vector<256x32xf32>
    %8 = arith.truncf %7 : vector<256x32xf32> to vector<256x32xbf16>
    %c0_6 = arith.constant 0 : index
    %c0_7 = arith.constant 0 : index
    %9 = vector.load %arg4[%c0_6, %c0_7] : memref<256x32xbf16, #tpu.memory_space<vmem>>, vector<256x32xbf16>
    tpu.vector_store %arg4[%c0_6, %c0_7], %8 {strides = array<i32>} : memref<256x32xbf16, #tpu.memory_space<vmem>>, vector<256x32xbf16>,
    return
  }
  func.func @transform_0(%arg0: i32) -> (i32, i32) {
    %c0_i32 = arith.constant 0 : i32
    %c0_i32_0 = arith.constant 0 : i32
    return %arg0, %c0_i32 : i32, i32
  }
  func.func @transform_1(%arg0: i32) -> (i32, i32) {
    %c0_i32 = arith.constant 0 : i32
    %c0_i32_0 = arith.constant 0 : i32
    %c0_i32_1 = arith.constant 0 : i32
    return %c0_i32, %c0_i32_0 : i32, i32
  }
  func.func @transform_2(%arg0: i32) -> (i32, i32) {
    %c0_i32 = arith.constant 0 : i32
    %c0_i32_0 = arith.constant 0 : i32
    %c0_i32_1 = arith.constant 0 : i32
    return %c0_i32, %c0_i32_0 : i32, i32
  }
  func.func @transform_3(%arg0: i32) -> (i32, i32) {
    %c0_i32 = arith.constant 0 : i32
    %c0_i32_0 = arith.constant 0 : i32
    return %arg0, %c0_i32 : i32, i32
  }
}

module attributes {stable_mosaic.version = 11 : i64} {
  func.func @_grouped_conv_kernel(%arg0: i32, %arg1: i32, %arg2: memref<1x16x16x32xbf16, #tpu.memory_space<vmem>>, %arg3: memref<1x9x32x32xbf16, #tpu.memory_space<vmem>>, %arg4: memref<1x32xf32, #tpu.memory_space<vmem>>, %arg5: memref<1x8x16x32xbf16, #tpu.memory_space<vmem>>, %arg6: memref<1x1x32xf32, #tpu.memory_space<vmem>>, %arg7: memref<18x18x32xf32, #tpu.memory_space<vmem>>) attributes {dimension_semantics = [#tpu.dimension_semantics<parallel>, #tpu.dimension_semantics<arbitrary>], iteration_bounds = array<i64: 2, 2>, scalar_prefetch = 0 : i64, scratch_operands = 1 : i64, tpu.core_type = #tpu.core_type<tc>, window_params = [{transform_indices = @transform_0, window_bounds = array<i64: 1, 16, 16, 32>}, {pipeline_mode = #tpu.pipeline_mode<synchronous>, transform_indices = @transform_1, window_bounds = array<i64: 1, 9, 32, 32>}, {pipeline_mode = #tpu.pipeline_mode<synchronous>, transform_indices = @transform_2, window_bounds = array<i64: 1, 32>}, {transform_indices = @transform_3, window_bounds = array<i64: 1, 8, 16, 32>}, {transform_indices = @transform_4, window_bounds = array<i64: 1, 1, 32>}]} {
    %c0_i32 = arith.constant 0 : i32
    %0 = arith.cmpi eq, %arg1, %c0_i32 : i32
    %1 = arith.extui %0 : i1 to i32
    %c0_i32_0 = arith.constant 0 : i32
    %2 = arith.cmpi ne, %1, %c0_i32_0 : i32
    scf.if %2 {
      %cst_79 = arith.constant 0.000000e+00 : f32
      %116 = vector.broadcast %cst_79 : f32 to vector<18x18x32xf32>
      %c0_80 = arith.constant 0 : index
      %c0_81 = arith.constant 0 : index
      %c0_82 = arith.constant 0 : index
      %117 = vector.load %arg7[%c0_80, %c0_81, %c0_82] : memref<18x18x32xf32, #tpu.memory_space<vmem>>, vector<18x18x32xf32>
      tpu.vector_store %arg7[%c0_80, %c0_81, %c0_82], %116 {strides = array<i32>} : memref<18x18x32xf32, #tpu.memory_space<vmem>>, vector<18x18x32xf32>,
      %c0_83 = arith.constant 0 : index
      %c0_84 = arith.constant 0 : index
      %c0_85 = arith.constant 0 : index
      %c0_86 = arith.constant 0 : index
      %118 = vector.load %arg2[%c0_83, %c0_84, %c0_85, %c0_86] : memref<1x16x16x32xbf16, #tpu.memory_space<vmem>>, vector<1x16x16x32xbf16>
      %119 = vector.shape_cast %118 : vector<1x16x16x32xbf16> to vector<16x16x32xbf16>
      %120 = arith.extf %119 : vector<16x16x32xbf16> to vector<16x16x32xf32>
      %c1_87 = arith.constant 1 : index
      %c1_88 = arith.constant 1 : index
      %c0_89 = arith.constant 0 : index
      %121 = vector.load %arg7[%c1_87, %c1_88, %c0_89] : memref<18x18x32xf32, #tpu.memory_space<vmem>>, vector<16x16x32xf32>
      tpu.vector_store %arg7[%c1_87, %c1_88, %c0_89], %120 {strides = array<i32>} : memref<18x18x32xf32, #tpu.memory_space<vmem>>, vector<16x16x32xf32>,
      %cst_90 = arith.constant 0.000000e+00 : f32
      %122 = vector.broadcast %cst_90 : f32 to vector<1x32xf32>
      %c0_91 = arith.constant 0 : index
      %c0_92 = arith.constant 0 : index
      %c0_93 = arith.constant 0 : index
      %123 = vector.load %arg6[%c0_91, %c0_92, %c0_93] : memref<1x1x32xf32, #tpu.memory_space<vmem>>, vector<1x1x32xf32>
      %124 = vector.shape_cast %123 : vector<1x1x32xf32> to vector<1x32xf32>
      %125 = vector.shape_cast %122 : vector<1x32xf32> to vector<1x1x32xf32>
      tpu.vector_store %arg6[%c0_91, %c0_92, %c0_93], %125 {strides = array<i32>} : memref<1x1x32xf32, #tpu.memory_space<vmem>>, vector<1x1x32xf32>,
    } else {
    }
    %c8_i32 = arith.constant 8 : i32
    %3 = arith.muli %arg1, %c8_i32 : i32
    %c8_i32_1 = arith.constant 8 : i32
    %4 = arith.muli %arg1, %c8_i32_1 : i32
    %5 = tpu.iota {dimensions = array<i32: 0>} : vector<8x1x1xi32>
    %6 = vector.broadcast %4 : i32 to vector<8x1x1xi32>
    %7 = arith.addi %6, %5 : vector<8x1x1xi32>
    %c16_i32 = arith.constant 16 : i32
    %8 = vector.broadcast %c16_i32 : i32 to vector<8x1x1xi32>
    %9 = arith.cmpi slt, %7, %8 : vector<8x1x1xi32>
    %cst = arith.constant 0.000000e+00 : f32
    %10 = vector.broadcast %cst : f32 to vector<128x32xf32>
    %c0_i32_2 = arith.constant 0 : i32
    %11 = arith.addi %3, %c0_i32_2 : i32
    %12 = arith.index_cast %11 : i32 to index
    %c0 = arith.constant 0 : index
    %c0_3 = arith.constant 0 : index
    %13 = vector.load %arg7[%12, %c0, %c0_3] : memref<18x18x32xf32, #tpu.memory_space<vmem>>, vector<8x16x32xf32>
    %14 = vector.shape_cast %13 : vector<8x16x32xf32> to vector<128x32xf32>
    %15 = arith.truncf %14 : vector<128x32xf32> to vector<128x32xbf16>
    %c0_4 = arith.constant 0 : index
    %c0_5 = arith.constant 0 : index
    %c0_6 = arith.constant 0 : index
    %c0_7 = arith.constant 0 : index
    %16 = vector.load %arg3[%c0_4, %c0_5, %c0_6, %c0_7] : memref<1x9x32x32xbf16, #tpu.memory_space<vmem>>, vector<1x1x32x32xbf16>
    %17 = vector.shape_cast %16 : vector<1x1x32x32xbf16> to vector<32x32xbf16>
    %cst_8 = arith.constant dense<0.000000e+00> : vector<128x32xf32>
    %18 = tpu.matmul %15, %17, %cst_8 {dimension_numbers = #tpu.dot_dimension_numbers<[1], [0], [0], [1], [0, 0, 1, 1], [], []>} : vector<128x32xbf16>, vector<32x32xbf16>, vector<128x32xf32> -> vector<128x32xf32>
    %19 = arith.addf %10, %18 : vector<128x32xf32>
    %c0_i32_9 = arith.constant 0 : i32
    %20 = arith.addi %3, %c0_i32_9 : i32
    %21 = arith.index_cast %20 : i32 to index
    %c1 = arith.constant 1 : index
    %c0_10 = arith.constant 0 : index
    %22 = vector.load %arg7[%21, %c1, %c0_10] : memref<18x18x32xf32, #tpu.memory_space<vmem>>, vector<8x16x32xf32>
    %23 = vector.shape_cast %22 : vector<8x16x32xf32> to vector<128x32xf32>
    %24 = arith.truncf %23 : vector<128x32xf32> to vector<128x32xbf16>
    %c0_11 = arith.constant 0 : index
    %c1_12 = arith.constant 1 : index
    %c0_13 = arith.constant 0 : index
    %c0_14 = arith.constant 0 : index
    %25 = vector.load %arg3[%c0_11, %c1_12, %c0_13, %c0_14] : memref<1x9x32x32xbf16, #tpu.memory_space<vmem>>, vector<1x1x32x32xbf16>
    %26 = vector.shape_cast %25 : vector<1x1x32x32xbf16> to vector<32x32xbf16>
    %cst_15 = arith.constant dense<0.000000e+00> : vector<128x32xf32>
    %27 = tpu.matmul %24, %26, %cst_15 {dimension_numbers = #tpu.dot_dimension_numbers<[1], [0], [0], [1], [0, 0, 1, 1], [], []>} : vector<128x32xbf16>, vector<32x32xbf16>, vector<128x32xf32> -> vector<128x32xf32>
    %28 = arith.addf %19, %27 : vector<128x32xf32>
    %c0_i32_16 = arith.constant 0 : i32
    %29 = arith.addi %3, %c0_i32_16 : i32
    %30 = arith.index_cast %29 : i32 to index
    %c2 = arith.constant 2 : index
    %c0_17 = arith.constant 0 : index
    %31 = vector.load %arg7[%30, %c2, %c0_17] : memref<18x18x32xf32, #tpu.memory_space<vmem>>, vector<8x16x32xf32>
    %32 = vector.shape_cast %31 : vector<8x16x32xf32> to vector<128x32xf32>
    %33 = arith.truncf %32 : vector<128x32xf32> to vector<128x32xbf16>
    %c0_18 = arith.constant 0 : index
    %c2_19 = arith.constant 2 : index
    %c0_20 = arith.constant 0 : index
    %c0_21 = arith.constant 0 : index
    %34 = vector.load %arg3[%c0_18, %c2_19, %c0_20, %c0_21] : memref<1x9x32x32xbf16, #tpu.memory_space<vmem>>, vector<1x1x32x32xbf16>
    %35 = vector.shape_cast %34 : vector<1x1x32x32xbf16> to vector<32x32xbf16>
    %cst_22 = arith.constant dense<0.000000e+00> : vector<128x32xf32>
    %36 = tpu.matmul %33, %35, %cst_22 {dimension_numbers = #tpu.dot_dimension_numbers<[1], [0], [0], [1], [0, 0, 1, 1], [], []>} : vector<128x32xbf16>, vector<32x32xbf16>, vector<128x32xf32> -> vector<128x32xf32>
    %37 = arith.addf %28, %36 : vector<128x32xf32>
    %c1_i32 = arith.constant 1 : i32
    %38 = arith.addi %3, %c1_i32 : i32
    %39 = arith.index_cast %38 : i32 to index
    %c0_23 = arith.constant 0 : index
    %c0_24 = arith.constant 0 : index
    %40 = vector.load %arg7[%39, %c0_23, %c0_24] : memref<18x18x32xf32, #tpu.memory_space<vmem>>, vector<8x16x32xf32>
    %41 = vector.shape_cast %40 : vector<8x16x32xf32> to vector<128x32xf32>
    %42 = arith.truncf %41 : vector<128x32xf32> to vector<128x32xbf16>
    %c0_25 = arith.constant 0 : index
    %c3 = arith.constant 3 : index
    %c0_26 = arith.constant 0 : index
    %c0_27 = arith.constant 0 : index
    %43 = vector.load %arg3[%c0_25, %c3, %c0_26, %c0_27] : memref<1x9x32x32xbf16, #tpu.memory_space<vmem>>, vector<1x1x32x32xbf16>
    %44 = vector.shape_cast %43 : vector<1x1x32x32xbf16> to vector<32x32xbf16>
    %cst_28 = arith.constant dense<0.000000e+00> : vector<128x32xf32>
    %45 = tpu.matmul %42, %44, %cst_28 {dimension_numbers = #tpu.dot_dimension_numbers<[1], [0], [0], [1], [0, 0, 1, 1], [], []>} : vector<128x32xbf16>, vector<32x32xbf16>, vector<128x32xf32> -> vector<128x32xf32>
    %46 = arith.addf %37, %45 : vector<128x32xf32>
    %c1_i32_29 = arith.constant 1 : i32
    %47 = arith.addi %3, %c1_i32_29 : i32
    %48 = arith.index_cast %47 : i32 to index
    %c1_30 = arith.constant 1 : index
    %c0_31 = arith.constant 0 : index
    %49 = vector.load %arg7[%48, %c1_30, %c0_31] : memref<18x18x32xf32, #tpu.memory_space<vmem>>, vector<8x16x32xf32>
    %50 = vector.shape_cast %49 : vector<8x16x32xf32> to vector<128x32xf32>
    %51 = arith.truncf %50 : vector<128x32xf32> to vector<128x32xbf16>
    %c0_32 = arith.constant 0 : index
    %c4 = arith.constant 4 : index
    %c0_33 = arith.constant 0 : index
    %c0_34 = arith.constant 0 : index
    %52 = vector.load %arg3[%c0_32, %c4, %c0_33, %c0_34] : memref<1x9x32x32xbf16, #tpu.memory_space<vmem>>, vector<1x1x32x32xbf16>
    %53 = vector.shape_cast %52 : vector<1x1x32x32xbf16> to vector<32x32xbf16>
    %cst_35 = arith.constant dense<0.000000e+00> : vector<128x32xf32>
    %54 = tpu.matmul %51, %53, %cst_35 {dimension_numbers = #tpu.dot_dimension_numbers<[1], [0], [0], [1], [0, 0, 1, 1], [], []>} : vector<128x32xbf16>, vector<32x32xbf16>, vector<128x32xf32> -> vector<128x32xf32>
    %55 = arith.addf %46, %54 : vector<128x32xf32>
    %c1_i32_36 = arith.constant 1 : i32
    %56 = arith.addi %3, %c1_i32_36 : i32
    %57 = arith.index_cast %56 : i32 to index
    %c2_37 = arith.constant 2 : index
    %c0_38 = arith.constant 0 : index
    %58 = vector.load %arg7[%57, %c2_37, %c0_38] : memref<18x18x32xf32, #tpu.memory_space<vmem>>, vector<8x16x32xf32>
    %59 = vector.shape_cast %58 : vector<8x16x32xf32> to vector<128x32xf32>
    %60 = arith.truncf %59 : vector<128x32xf32> to vector<128x32xbf16>
    %c0_39 = arith.constant 0 : index
    %c5 = arith.constant 5 : index
    %c0_40 = arith.constant 0 : index
    %c0_41 = arith.constant 0 : index
    %61 = vector.load %arg3[%c0_39, %c5, %c0_40, %c0_41] : memref<1x9x32x32xbf16, #tpu.memory_space<vmem>>, vector<1x1x32x32xbf16>
    %62 = vector.shape_cast %61 : vector<1x1x32x32xbf16> to vector<32x32xbf16>
    %cst_42 = arith.constant dense<0.000000e+00> : vector<128x32xf32>
    %63 = tpu.matmul %60, %62, %cst_42 {dimension_numbers = #tpu.dot_dimension_numbers<[1], [0], [0], [1], [0, 0, 1, 1], [], []>} : vector<128x32xbf16>, vector<32x32xbf16>, vector<128x32xf32> -> vector<128x32xf32>
    %64 = arith.addf %55, %63 : vector<128x32xf32>
    %c2_i32 = arith.constant 2 : i32
    %65 = arith.addi %3, %c2_i32 : i32
    %66 = arith.index_cast %65 : i32 to index
    %c0_43 = arith.constant 0 : index
    %c0_44 = arith.constant 0 : index
    %67 = vector.load %arg7[%66, %c0_43, %c0_44] : memref<18x18x32xf32, #tpu.memory_space<vmem>>, vector<8x16x32xf32>
    %68 = vector.shape_cast %67 : vector<8x16x32xf32> to vector<128x32xf32>
    %69 = arith.truncf %68 : vector<128x32xf32> to vector<128x32xbf16>
    %c0_45 = arith.constant 0 : index
    %c6 = arith.constant 6 : index
    %c0_46 = arith.constant 0 : index
    %c0_47 = arith.constant 0 : index
    %70 = vector.load %arg3[%c0_45, %c6, %c0_46, %c0_47] : memref<1x9x32x32xbf16, #tpu.memory_space<vmem>>, vector<1x1x32x32xbf16>
    %71 = vector.shape_cast %70 : vector<1x1x32x32xbf16> to vector<32x32xbf16>
    %cst_48 = arith.constant dense<0.000000e+00> : vector<128x32xf32>
    %72 = tpu.matmul %69, %71, %cst_48 {dimension_numbers = #tpu.dot_dimension_numbers<[1], [0], [0], [1], [0, 0, 1, 1], [], []>} : vector<128x32xbf16>, vector<32x32xbf16>, vector<128x32xf32> -> vector<128x32xf32>
    %73 = arith.addf %64, %72 : vector<128x32xf32>
    %c2_i32_49 = arith.constant 2 : i32
    %74 = arith.addi %3, %c2_i32_49 : i32
    %75 = arith.index_cast %74 : i32 to index
    %c1_50 = arith.constant 1 : index
    %c0_51 = arith.constant 0 : index
    %76 = vector.load %arg7[%75, %c1_50, %c0_51] : memref<18x18x32xf32, #tpu.memory_space<vmem>>, vector<8x16x32xf32>
    %77 = vector.shape_cast %76 : vector<8x16x32xf32> to vector<128x32xf32>
    %78 = arith.truncf %77 : vector<128x32xf32> to vector<128x32xbf16>
    %c0_52 = arith.constant 0 : index
    %c7 = arith.constant 7 : index
    %c0_53 = arith.constant 0 : index
    %c0_54 = arith.constant 0 : index
    %79 = vector.load %arg3[%c0_52, %c7, %c0_53, %c0_54] : memref<1x9x32x32xbf16, #tpu.memory_space<vmem>>, vector<1x1x32x32xbf16>
    %80 = vector.shape_cast %79 : vector<1x1x32x32xbf16> to vector<32x32xbf16>
    %cst_55 = arith.constant dense<0.000000e+00> : vector<128x32xf32>
    %81 = tpu.matmul %78, %80, %cst_55 {dimension_numbers = #tpu.dot_dimension_numbers<[1], [0], [0], [1], [0, 0, 1, 1], [], []>} : vector<128x32xbf16>, vector<32x32xbf16>, vector<128x32xf32> -> vector<128x32xf32>
    %82 = arith.addf %73, %81 : vector<128x32xf32>
    %c2_i32_56 = arith.constant 2 : i32
    %83 = arith.addi %3, %c2_i32_56 : i32
    %84 = arith.index_cast %83 : i32 to index
    %c2_57 = arith.constant 2 : index
    %c0_58 = arith.constant 0 : index
    %85 = vector.load %arg7[%84, %c2_57, %c0_58] : memref<18x18x32xf32, #tpu.memory_space<vmem>>, vector<8x16x32xf32>
    %86 = vector.shape_cast %85 : vector<8x16x32xf32> to vector<128x32xf32>
    %87 = arith.truncf %86 : vector<128x32xf32> to vector<128x32xbf16>
    %c0_59 = arith.constant 0 : index
    %c8 = arith.constant 8 : index
    %c0_60 = arith.constant 0 : index
    %c0_61 = arith.constant 0 : index
    %88 = vector.load %arg3[%c0_59, %c8, %c0_60, %c0_61] : memref<1x9x32x32xbf16, #tpu.memory_space<vmem>>, vector<1x1x32x32xbf16>
    %89 = vector.shape_cast %88 : vector<1x1x32x32xbf16> to vector<32x32xbf16>
    %cst_62 = arith.constant dense<0.000000e+00> : vector<128x32xf32>
    %90 = tpu.matmul %87, %89, %cst_62 {dimension_numbers = #tpu.dot_dimension_numbers<[1], [0], [0], [1], [0, 0, 1, 1], [], []>} : vector<128x32xbf16>, vector<32x32xbf16>, vector<128x32xf32> -> vector<128x32xf32>
    %91 = arith.addf %82, %90 : vector<128x32xf32>
    %c0_63 = arith.constant 0 : index
    %c0_64 = arith.constant 0 : index
    %92 = vector.load %arg4[%c0_63, %c0_64] : memref<1x32xf32, #tpu.memory_space<vmem>>, vector<1x32xf32>
    %93 = vector.broadcast %92 : vector<1x32xf32> to vector<128x32xf32>
    %94 = arith.addf %91, %93 : vector<128x32xf32>
    %cst_65 = arith.constant 0.000000e+00 : f32
    %95 = vector.broadcast %cst_65 : f32 to vector<128x32xf32>
    %96 = arith.maximumf %94, %95 : vector<128x32xf32>
    %97 = vector.shape_cast %96 : vector<128x32xf32> to vector<8x16x32xf32>
    %98 = arith.truncf %97 : vector<8x16x32xf32> to vector<8x16x32xbf16>
    %c0_66 = arith.constant 0 : index
    %c0_67 = arith.constant 0 : index
    %c0_68 = arith.constant 0 : index
    %c0_69 = arith.constant 0 : index
    %99 = vector.load %arg5[%c0_66, %c0_67, %c0_68, %c0_69] : memref<1x8x16x32xbf16, #tpu.memory_space<vmem>>, vector<1x8x16x32xbf16>
    %100 = vector.shape_cast %99 : vector<1x8x16x32xbf16> to vector<8x16x32xbf16>
    %101 = vector.shape_cast %98 : vector<8x16x32xbf16> to vector<1x8x16x32xbf16>
    tpu.vector_store %arg5[%c0_66, %c0_67, %c0_68, %c0_69], %101 {strides = array<i32>} : memref<1x8x16x32xbf16, #tpu.memory_space<vmem>>, vector<1x8x16x32xbf16>,
    %c0_70 = arith.constant 0 : index
    %c0_71 = arith.constant 0 : index
    %c0_72 = arith.constant 0 : index
    %102 = vector.load %arg6[%c0_70, %c0_71, %c0_72] : memref<1x1x32xf32, #tpu.memory_space<vmem>>, vector<1x1x32xf32>
    %103 = vector.shape_cast %102 : vector<1x1x32xf32> to vector<1x32xf32>
    %cst_73 = arith.constant 0.000000e+00 : f32
    %104 = vector.shape_cast %9 : vector<8x1x1xi1> to vector<8x1x1xi1>
    %105 = vector.broadcast %104 : vector<8x1x1xi1> to vector<8x16x32xi1>
    %106 = vector.broadcast %cst_73 : f32 to vector<8x16x32xf32>
    %107 = arith.select %105, %97, %106 : vector<8x16x32xi1>, vector<8x16x32xf32>
    %cst_74 = arith.constant dense<0.000000e+00> : vector<32xf32>
    %108 = vector.multi_reduction <add>, %107, %cst_74 [0, 1] : vector<8x16x32xf32> to vector<32xf32>
    %109 = vector.shape_cast %108 : vector<32xf32> to vector<1x32xf32>
    %cst_75 = arith.constant 3.906250e-03 : f32
    %110 = vector.broadcast %cst_75 : f32 to vector<1x32xf32>
    %111 = arith.mulf %109, %110 : vector<1x32xf32>
    %112 = arith.addf %103, %111 : vector<1x32xf32>
    %c0_76 = arith.constant 0 : index
    %c0_77 = arith.constant 0 : index
    %c0_78 = arith.constant 0 : index
    %113 = vector.load %arg6[%c0_76, %c0_77, %c0_78] : memref<1x1x32xf32, #tpu.memory_space<vmem>>, vector<1x1x32xf32>
    %114 = vector.shape_cast %113 : vector<1x1x32xf32> to vector<1x32xf32>
    %115 = vector.shape_cast %112 : vector<1x32xf32> to vector<1x1x32xf32>
    tpu.vector_store %arg6[%c0_76, %c0_77, %c0_78], %115 {strides = array<i32>} : memref<1x1x32xf32, #tpu.memory_space<vmem>>, vector<1x1x32xf32>,
    return
  }
  func.func @transform_0(%arg0: i32, %arg1: i32) -> (i32, i32, i32, i32) {
    %c0_i32 = arith.constant 0 : i32
    %c0_i32_0 = arith.constant 0 : i32
    %c0_i32_1 = arith.constant 0 : i32
    %c0_i32_2 = arith.constant 0 : i32
    return %arg0, %c0_i32, %c0_i32_0, %c0_i32_1 : i32, i32, i32, i32
  }
  func.func @transform_1(%arg0: i32, %arg1: i32) -> (i32, i32, i32, i32) {
    %c0_i32 = arith.constant 0 : i32
    %c0_i32_0 = arith.constant 0 : i32
    %c0_i32_1 = arith.constant 0 : i32
    %c0_i32_2 = arith.constant 0 : i32
    %c0_i32_3 = arith.constant 0 : i32
    return %c0_i32, %c0_i32_0, %c0_i32_1, %c0_i32_2 : i32, i32, i32, i32
  }
  func.func @transform_2(%arg0: i32, %arg1: i32) -> (i32, i32) {
    %c0_i32 = arith.constant 0 : i32
    %c0_i32_0 = arith.constant 0 : i32
    %c0_i32_1 = arith.constant 0 : i32
    return %c0_i32, %c0_i32_0 : i32, i32
  }
  func.func @transform_3(%arg0: i32, %arg1: i32) -> (i32, i32, i32, i32) {
    %c0_i32 = arith.constant 0 : i32
    %c0_i32_0 = arith.constant 0 : i32
    %c0_i32_1 = arith.constant 0 : i32
    return %arg0, %arg1, %c0_i32, %c0_i32_0 : i32, i32, i32, i32
  }
  func.func @transform_4(%arg0: i32, %arg1: i32) -> (i32, i32, i32) {
    %c0_i32 = arith.constant 0 : i32
    %c0_i32_0 = arith.constant 0 : i32
    %c0_i32_1 = arith.constant 0 : i32
    return %arg0, %c0_i32, %c0_i32_0 : i32, i32, i32
  }
}

module attributes {stable_mosaic.version = 11 : i64} {
  func.func @_fused_out_proj_kernel(%arg0: i32, %arg1: i32, %arg2: memref<1x128x32xbf16, #tpu.memory_space<vmem>>, %arg3: memref<1x128x16xbf16, #tpu.memory_space<vmem>>, %arg4: memref<1x1x32xf32, #tpu.memory_space<vmem>>, %arg5: memref<32x32xbf16, #tpu.memory_space<vmem>>, %arg6: memref<1x32xf32, #tpu.memory_space<vmem>>, %arg7: memref<16x32xbf16, #tpu.memory_space<vmem>>, %arg8: memref<1x32xf32, #tpu.memory_space<vmem>>, %arg9: memref<1x128x32xbf16, #tpu.memory_space<vmem>>) attributes {dimension_semantics = [#tpu.dimension_semantics<parallel>, #tpu.dimension_semantics<parallel>], iteration_bounds = array<i64: 2, 2>, scalar_prefetch = 0 : i64, scratch_operands = 0 : i64, tpu.core_type = #tpu.core_type<tc>, window_params = [{transform_indices = @transform_0, window_bounds = array<i64: 1, 128, 32>}, {transform_indices = @transform_1, window_bounds = array<i64: 1, 128, 16>}, {transform_indices = @transform_2, window_bounds = array<i64: 1, 1, 32>}, {pipeline_mode = #tpu.pipeline_mode<synchronous>, transform_indices = @transform_3, window_bounds = array<i64: 32, 32>}, {pipeline_mode = #tpu.pipeline_mode<synchronous>, transform_indices = @transform_4, window_bounds = array<i64: 1, 32>}, {pipeline_mode = #tpu.pipeline_mode<synchronous>, transform_indices = @transform_5, window_bounds = array<i64: 16, 32>}, {pipeline_mode = #tpu.pipeline_mode<synchronous>, transform_indices = @transform_6, window_bounds = array<i64: 1, 32>}, {transform_indices = @transform_7, window_bounds = array<i64: 1, 128, 32>}]} {
    %c0 = arith.constant 0 : index
    %c0_0 = arith.constant 0 : index
    %c0_1 = arith.constant 0 : index
    %0 = vector.load %arg2[%c0, %c0_0, %c0_1] : memref<1x128x32xbf16, #tpu.memory_space<vmem>>, vector<1x128x32xbf16>
    %1 = vector.shape_cast %0 : vector<1x128x32xbf16> to vector<128x32xbf16>
    %c0_2 = arith.constant 0 : index
    %c0_3 = arith.constant 0 : index
    %2 = vector.load %arg5[%c0_2, %c0_3] : memref<32x32xbf16, #tpu.memory_space<vmem>>, vector<32x32xbf16>
    %cst = arith.constant dense<0.000000e+00> : vector<128x32xf32>
    %3 = tpu.matmul %1, %2, %cst {dimension_numbers = #tpu.dot_dimension_numbers<[1], [0], [0], [1], [0, 0, 1, 1], [], []>} : vector<128x32xbf16>, vector<32x32xbf16>, vector<128x32xf32> -> vector<128x32xf32>
    %c0_4 = arith.constant 0 : index
    %c0_5 = arith.constant 0 : index
    %4 = vector.load %arg6[%c0_4, %c0_5] : memref<1x32xf32, #tpu.memory_space<vmem>>, vector<1x32xf32>
    %5 = vector.broadcast %4 : vector<1x32xf32> to vector<128x32xf32>
    %6 = arith.addf %3, %5 : vector<128x32xf32>
    %c0_6 = arith.constant 0 : index
    %c0_7 = arith.constant 0 : index
    %c0_8 = arith.constant 0 : index
    %7 = vector.load %arg3[%c0_6, %c0_7, %c0_8] : memref<1x128x16xbf16, #tpu.memory_space<vmem>>, vector<1x128x16xbf16>
    %8 = vector.shape_cast %7 : vector<1x128x16xbf16> to vector<128x16xbf16>
    %c0_9 = arith.constant 0 : index
    %c0_10 = arith.constant 0 : index
    %9 = vector.load %arg7[%c0_9, %c0_10] : memref<16x32xbf16, #tpu.memory_space<vmem>>, vector<16x32xbf16>
    %cst_11 = arith.constant dense<0.000000e+00> : vector<128x32xf32>
    %10 = tpu.matmul %8, %9, %cst_11 {dimension_numbers = #tpu.dot_dimension_numbers<[1], [0], [0], [1], [0, 0, 1, 1], [], []>} : vector<128x16xbf16>, vector<16x32xbf16>, vector<128x32xf32> -> vector<128x32xf32>
    %c0_12 = arith.constant 0 : index
    %c0_13 = arith.constant 0 : index
    %11 = vector.load %arg8[%c0_12, %c0_13] : memref<1x32xf32, #tpu.memory_space<vmem>>, vector<1x32xf32>
    %12 = vector.broadcast %11 : vector<1x32xf32> to vector<128x32xf32>
    %13 = arith.addf %10, %12 : vector<128x32xf32>
    %c0_14 = arith.constant 0 : index
    %c0_15 = arith.constant 0 : index
    %c0_16 = arith.constant 0 : index
    %14 = vector.load %arg4[%c0_14, %c0_15, %c0_16] : memref<1x1x32xf32, #tpu.memory_space<vmem>>, vector<1x1x32xf32>
    %15 = vector.shape_cast %14 : vector<1x1x32xf32> to vector<1x32xf32>
    %16 = vector.broadcast %15 : vector<1x32xf32> to vector<128x32xf32>
    %17 = arith.mulf %6, %16 : vector<128x32xf32>
    %18 = arith.addf %17, %13 : vector<128x32xf32>
    %cst_17 = arith.constant 0.000000e+00 : f32
    %19 = vector.broadcast %cst_17 : f32 to vector<128x32xf32>
    %20 = arith.maximumf %18, %19 : vector<128x32xf32>
    %21 = arith.truncf %20 : vector<128x32xf32> to vector<128x32xbf16>
    %c0_18 = arith.constant 0 : index
    %c0_19 = arith.constant 0 : index
    %c0_20 = arith.constant 0 : index
    %22 = vector.load %arg9[%c0_18, %c0_19, %c0_20] : memref<1x128x32xbf16, #tpu.memory_space<vmem>>, vector<1x128x32xbf16>
    %23 = vector.shape_cast %22 : vector<1x128x32xbf16> to vector<128x32xbf16>
    %24 = vector.shape_cast %21 : vector<128x32xbf16> to vector<1x128x32xbf16>
    tpu.vector_store %arg9[%c0_18, %c0_19, %c0_20], %24 {strides = array<i32>} : memref<1x128x32xbf16, #tpu.memory_space<vmem>>, vector<1x128x32xbf16>,
    return
  }
  func.func @transform_0(%arg0: i32, %arg1: i32) -> (i32, i32, i32) {
    %c0_i32 = arith.constant 0 : i32
    %c0_i32_0 = arith.constant 0 : i32
    return %arg0, %arg1, %c0_i32 : i32, i32, i32
  }
  func.func @transform_1(%arg0: i32, %arg1: i32) -> (i32, i32, i32) {
    %c0_i32 = arith.constant 0 : i32
    %c0_i32_0 = arith.constant 0 : i32
    return %arg0, %arg1, %c0_i32 : i32, i32, i32
  }
  func.func @transform_2(%arg0: i32, %arg1: i32) -> (i32, i32, i32) {
    %c0_i32 = arith.constant 0 : i32
    %c0_i32_0 = arith.constant 0 : i32
    %c0_i32_1 = arith.constant 0 : i32
    return %arg0, %c0_i32, %c0_i32_0 : i32, i32, i32
  }
  func.func @transform_3(%arg0: i32, %arg1: i32) -> (i32, i32) {
    %c0_i32 = arith.constant 0 : i32
    %c0_i32_0 = arith.constant 0 : i32
    %c0_i32_1 = arith.constant 0 : i32
    return %c0_i32, %c0_i32_0 : i32, i32
  }
  func.func @transform_4(%arg0: i32, %arg1: i32) -> (i32, i32) {
    %c0_i32 = arith.constant 0 : i32
    %c0_i32_0 = arith.constant 0 : i32
    %c0_i32_1 = arith.constant 0 : i32
    return %c0_i32, %c0_i32_0 : i32, i32
  }
  func.func @transform_5(%arg0: i32, %arg1: i32) -> (i32, i32) {
    %c0_i32 = arith.constant 0 : i32
    %c0_i32_0 = arith.constant 0 : i32
    %c0_i32_1 = arith.constant 0 : i32
    return %c0_i32, %c0_i32_0 : i32, i32
  }
  func.func @transform_6(%arg0: i32, %arg1: i32) -> (i32, i32) {
    %c0_i32 = arith.constant 0 : i32
    %c0_i32_0 = arith.constant 0 : i32
    %c0_i32_1 = arith.constant 0 : i32
    return %c0_i32, %c0_i32_0 : i32, i32
  }
  func.func @transform_7(%arg0: i32, %arg1: i32) -> (i32, i32, i32) {
    %c0_i32 = arith.constant 0 : i32
    %c0_i32_0 = arith.constant 0 : i32
    return %arg0, %arg1, %c0_i32 : i32, i32, i32
  }
}

</mosaic_0001>

<bundles_post_ra>
// kernel: se_resnext_bottleneck_pallas.3
= control target key start
LH: loop header
LB: loop body
LE: loop exit
PB: predicated region body
PF: predicated region fallthrough
CT: control target
= control target key end

     0   :  { %s976_s12 = smov 0   ;;  %s1140_s0 = inlined_call_operand.vmem [shape: bf16[512,16], index: 0, kind: input, shape index: {}]   ;;  %s1141_s1 = inlined_call_operand.vmem [shape: bf16[16,32], index: 1, kind: input, shape index: {}]   ;;  %s1142_s2 = inlined_call_operand.vmem [shape: f32[1,32], index: 2, kind: input, shape index: {}]   ;;  %s1143_s3 = inlined_call_operand.vmem [shape: bf16[512,32], index: 3, kind: output, shape index: {}]  }
   0x1 LB: > { %s761_s13 = sadd.s32 4294967295, %s954_s12   ;;  %p765_p0 = scmp.ge.s32.totalorder %s954_s12, 1  ;;  %s954_s12 = sphi %s976_s12, %s13_s12  }
   0x2   : > { %p138_p1 = scmp.lt.s32.totalorder %s954_s12, 3 }
   0x4   : > { %p139_p2 = pnand %p765_p0, %p138_p1 }
   0x5   : > { %v931_v0 = vld [vmem:[%s1141_s1] sm:$0xff] (!%p139_p2)   ;;  %s766_s16 = sshll.u32 (!%p139_p2), %s761_s13, 5  ;;  %vm302_vm0 = vcmask (!%p139_p2), 130048   ;;  %vm672_vm1 = vcmask (!%p139_p2), 257024  }
   0x6   : > { %142 = sbr.rel (%p139_p2) target bundleno = 265 (0x109), region = 32  ;;  %p163_p3 = scmp.lt.s32.totalorder (!%p139_p2), %s766_s16, 63  ;;  %887 = vmatprep.subr.bf16.mxu0 (!%p139_p2), %v931_v0  ;;  %921 = vmatprep.subr.bf16.mxu1 (!%p139_p2), %v931_v0  ;;  %v1032_v17 = vld [vmem:[%s1142_s2] ss:$0 sm:$0xff] (!%p139_p2) }
   0x7   : > { %888 = vmatpush3.bf16.msra.mxu0 (!%p139_p2), %v931_v0  ;;  %922 = vmatpush3.bf16.msra.mxu1 (!%p139_p2), %v931_v0 }
   0xd   : > { %s1145_s16 = smov (!%p163_p3, %s766_s16), 63 }
   0xe   : > { %s767_s17 = sshll.u32 %s1145_s16, 2 }
   0xf   : > { %s995_s20 = scalar_lea.vmem %s1140_s0, %s767_s17  ;;  %s1044_s25 = scalar_lea.vmem %s1143_s3, %s767_s17 }
  0x10   : > { %v932_v1 = vld [vmem:[%s995_s20] sm:$0xff]   ;;  %v934_v3 = vld [vmem:[%s995_s20 + $0x8] sm:$0xff]   ;;  %v936_v5 = vld [vmem:[%s995_s20 + $0x10] sm:$0xff]  }
  0x11   : > { %v933_v2 = vld [vmem:[%s995_s20 + $0x40] sm:$0xff]   ;;  %889 = vmatprep.mubr.msk.bf16.mxu0 %vm302_vm0, %v932_v1  ;;  %v935_v4 = vld [vmem:[%s995_s20 + $0x48] sm:$0xff]   ;;  %v937_v6 = vld [vmem:[%s995_s20 + $0x50] sm:$0xff]  }
  0x12   : > { %905 = vmatprep.mubr.msk.bf16.mxu1 %vm302_vm0, %v933_v2  ;;  %890 = vmatmul.mubr.msk.bf16.vlgmr.msra.gmra.mrb[0].mxu0 %vm302_vm0, %v934_v3  ;;  %v938_v7 = vld [vmem:[%s995_s20 + $0x18] sm:$0xff]   ;;  %v940_v9 = vld [vmem:[%s995_s20 + $0x20] sm:$0xff]   ;;  %v942_v11 = vld [vmem:[%s995_s20 + $0x28] sm:$0xff]  }
  0x13   : > { %906 = vmatmul.mubr.msk.bf16.vlgmr.msra.gmra.mrb[0].mxu1 %vm302_vm0, %v935_v4  ;;  %893 = vmatprep.mubr.msk.bf16.mxu0 %vm302_vm0, %v936_v5  ;;  %v939_v8 = vld [vmem:[%s995_s20 + $0x58] sm:$0xff]   ;;  %v941_v10 = vld [vmem:[%s995_s20 + $0x60] sm:$0xff]   ;;  %v943_v12 = vld [vmem:[%s995_s20 + $0x68] sm:$0xff]  }
  0x14   : > { %909 = vmatprep.mubr.msk.bf16.mxu1 %vm302_vm0, %v937_v6  ;;  %v944_v13 = vld [vmem:[%s995_s20 + $0x30] sm:$0xff]   ;;  %v946_v15 = vld [vmem:[%s995_s20 + $0x38] sm:$0xff]  }
  0x15   : > { %v945_v14 = vld [vmem:[%s995_s20 + $0x70] sm:$0xff]   ;;  %v947_v16 = vld [vmem:[%s995_s20 + $0x78] sm:$0xff]  }
  0x1a   : > { %894 = vmatmul.mubr.msk.bf16.gmra.mrb[4].mxu0 %vm302_vm0, %v938_v7 }
  0x1b   : > { %910 = vmatmul.mubr.msk.bf16.gmra.mrb[4].mxu1 %vm302_vm0, %v939_v8  ;;  %897 = vmatprep.mubr.msk.bf16.mxu0 %vm302_vm0, %v940_v9 }
  0x1c   : > { %913 = vmatprep.mubr.msk.bf16.mxu1 %vm302_vm0, %v941_v10 }
  0x22   : > { %898 = vmatmul.mubr.msk.bf16.gmra.mrb[8].mxu0 %vm302_vm0, %v942_v11 }
  0x23   : > { %914 = vmatmul.mubr.msk.bf16.gmra.mrb[8].mxu1 %vm302_vm0, %v943_v12  ;;  %901 = vmatprep.mubr.msk.bf16.mxu0 %vm302_vm0, %v944_v13 }
  0x24   : > { %917 = vmatprep.mubr.msk.bf16.mxu1 %vm302_vm0, %v945_v14 }
  0x2a   : > { %902 = vmatmul.mubr.msk.bf16.gmra.mrb[12].mxu0 %vm302_vm0, %v946_v15 }
  0x2b   : > { %918 = vmatmul.mubr.msk.bf16.gmra.mrb[12].mxu1 %vm302_vm0, %v947_v16 }
  0xe5   : > { %v891_v18 = vpop.f32.mrb[0].mxu0 }
  0xe6   : > { %v394_v19 = vadd.f32 %v891_v18, %v1032_v17  ;;  %v907_v20 = vpop.f32.mrb[0].mxu1  ;;  %v385_v21 = vpop.f32.mrb[1].mxu0 }
  0xe7   : > { %v458_v22 = vadd.f32 %v907_v20, %v1032_v17  ;;  %v386_v23 = vadd.f32 %v1032_v17, %v385_v21  ;;  %v449_v24 = vpop.f32.mrb[1].mxu1  ;;  %v892_v25 = vpop.f32.mrb[2].mxu0 }
  0xe8   : > { %v514_v26 = vmax.f32 %v394_v19, 0.0  ;;  %v450_v27 = vadd.f32 %v1032_v17, %v449_v24  ;;  %v397_v28 = vadd.f32 %v892_v25, %v1032_v17  ;;  %v908_v29 = vpop.f32.mrb[2].mxu1  ;;  %v388_v30 = vpop.f32.mrb[3].mxu0 }
  0xe9   : > { %v530_v31 = vmax.f32 %v458_v22, 0.0  ;;  %v512_v32 = vmax.f32 %v386_v23, 0.0  ;;  %v461_v33 = vadd.f32 %v908_v29, %v1032_v17  ;;  %v389_v34 = vadd.f32 %v1032_v17, %v388_v30  ;;  %v452_v35 = vpop.f32.mrb[3].mxu1 }
  0xea   : > { %v840_v36 = vpack.c.bf16 %v514_v26, %v514_v26  ;;  %v528_v37 = vmax.f32 %v450_v27, 0.0  ;;  %v515_v38 = vmax.f32 %v397_v28, 0.0  ;;  %v453_v39 = vadd.f32 %v1032_v17, %v452_v35 }
  0xeb   : > { %v856_v40 = vpack.c.bf16 %v530_v31, %v530_v31  ;;  %v838_v41 = vpack.c.bf16 %v512_v32, %v512_v32  ;;  %v531_v42 = vmax.f32 %v461_v33, 0.0  ;;  %v513_v43 = vmax.f32 %v389_v34, 0.0 }
  0xec   : > { %675 = vst.msk [vmem:[%s1044_s25 + $0x8] sm:$0xf] %vm672_vm1, %v840_v36  ;;  %v854_v44 = vpack.c.bf16 %v528_v37, %v528_v37  ;;  %v841_v45 = vpack.c.bf16 %v515_v38, %v515_v38  ;;  %v529_v46 = vmax.f32 %v453_v39, 0.0 }
  0xed   : > { %691 = vst.msk [vmem:[%s1044_s25 + $0x48] sm:$0xf] %vm672_vm1, %v856_v40  ;;  %673 = vst.msk [vmem:[%s1044_s25] sm:$0xf] %vm672_vm1, %v838_v41  ;;  %v857_v47 = vpack.c.bf16 %v531_v42, %v531_v42  ;;  %v839_v48 = vpack.c.bf16 %v513_v43, %v513_v43  ;;  %v895_v49 = vpop.f32.mrb[4].mxu0 }
  0xee   : > { %689 = vst.msk [vmem:[%s1044_s25 + $0x40] sm:$0xf] %vm672_vm1, %v854_v44  ;;  %676 = vst.msk [vmem:[%s1044_s25 + $0xc] sm:$0xf] %vm672_vm1, %v841_v45  ;;  %v855_v50 = vpack.c.bf16 %v529_v46, %v529_v46  ;;  %v410_v51 = vadd.f32 %v895_v49, %v1032_v17  ;;  %v911_v52 = vpop.f32.mrb[4].mxu1  ;;  %v401_v53 = vpop.f32.mrb[5].mxu0 }
  0xef   : > { %692 = vst.msk [vmem:[%s1044_s25 + $0x4c] sm:$0xf] %vm672_vm1, %v857_v47  ;;  %674 = vst.msk [vmem:[%s1044_s25 + $0x4] sm:$0xf] %vm672_vm1, %v839_v48  ;;  %v474_v54 = vadd.f32 %v911_v52, %v1032_v17  ;;  %v402_v55 = vadd.f32 %v1032_v17, %v401_v53  ;;  %v465_v56 = vpop.f32.mrb[5].mxu1  ;;  %v896_v57 = vpop.f32.mrb[6].mxu0 }
  0xf0   : > { %690 = vst.msk [vmem:[%s1044_s25 + $0x44] sm:$0xf] %vm672_vm1, %v855_v50  ;;  %v518_v58 = vmax.f32 %v410_v51, 0.0  ;;  %v466_v59 = vadd.f32 %v1032_v17, %v465_v56  ;;  %v413_v60 = vadd.f32 %v896_v57, %v1032_v17  ;;  %v912_v61 = vpop.f32.mrb[6].mxu1  ;;  %v404_v62 = vpop.f32.mrb[7].mxu0 }
  0xf1   : > { %v534_v63 = vmax.f32 %v474_v54, 0.0  ;;  %v516_v0 = vmax.f32 %v402_v55, 0.0  ;;  %v477_v1 = vadd.f32 %v912_v61, %v1032_v17  ;;  %v405_v2 = vadd.f32 %v1032_v17, %v404_v62  ;;  %v468_v3 = vpop.f32.mrb[7].mxu1 }
  0xf2   : > { %v844_v4 = vpack.c.bf16 %v518_v58, %v518_v58  ;;  %v532_v5 = vmax.f32 %v466_v59, 0.0  ;;  %v519_v6 = vmax.f32 %v413_v60, 0.0  ;;  %v469_v7 = vadd.f32 %v1032_v17, %v468_v3 }
  0xf3   : > { %v860_v8 = vpack.c.bf16 %v534_v63, %v534_v63  ;;  %v842_v9 = vpack.c.bf16 %v516_v0, %v516_v0  ;;  %v535_v10 = vmax.f32 %v477_v1, 0.0  ;;  %v517_v11 = vmax.f32 %v405_v2, 0.0 }
  0xf4   : > { %679 = vst.msk [vmem:[%s1044_s25 + $0x18] sm:$0xf] %vm672_vm1, %v844_v4  ;;  %v858_v12 = vpack.c.bf16 %v532_v5, %v532_v5  ;;  %v845_v13 = vpack.c.bf16 %v519_v6, %v519_v6  ;;  %v533_v14 = vmax.f32 %v469_v7, 0.0 }
  0xf5   : > { %695 = vst.msk [vmem:[%s1044_s25 + $0x58] sm:$0xf] %vm672_vm1, %v860_v8  ;;  %677 = vst.msk [vmem:[%s1044_s25 + $0x10] sm:$0xf] %vm672_vm1, %v842_v9  ;;  %v861_v15 = vpack.c.bf16 %v535_v10, %v535_v10  ;;  %v843_v16 = vpack.c.bf16 %v517_v11, %v517_v11  ;;  %v899_v18 = vpop.f32.mrb[8].mxu0 }
  0xf6   : > { %693 = vst.msk [vmem:[%s1044_s25 + $0x50] sm:$0xf] %vm672_vm1, %v858_v12  ;;  %680 = vst.msk [vmem:[%s1044_s25 + $0x1c] sm:$0xf] %vm672_vm1, %v845_v13  ;;  %v859_v19 = vpack.c.bf16 %v533_v14, %v533_v14  ;;  %v426_v20 = vadd.f32 %v899_v18, %v1032_v17  ;;  %v915_v21 = vpop.f32.mrb[8].mxu1  ;;  %v417_v22 = vpop.f32.mrb[9].mxu0 }
  0xf7   : > { %696 = vst.msk [vmem:[%s1044_s25 + $0x5c] sm:$0xf] %vm672_vm1, %v861_v15  ;;  %678 = vst.msk [vmem:[%s1044_s25 + $0x14] sm:$0xf] %vm672_vm1, %v843_v16  ;;  %v490_v23 = vadd.f32 %v915_v21, %v1032_v17  ;;  %v418_v24 = vadd.f32 %v1032_v17, %v417_v22  ;;  %v481_v25 = vpop.f32.mrb[9].mxu1  ;;  %v900_v26 = vpop.f32.mrb[10].mxu0 }
  0xf8   : > { %694 = vst.msk [vmem:[%s1044_s25 + $0x54] sm:$0xf] %vm672_vm1, %v859_v19  ;;  %v522_v27 = vmax.f32 %v426_v20, 0.0  ;;  %v482_v28 = vadd.f32 %v1032_v17, %v481_v25  ;;  %v429_v29 = vadd.f32 %v900_v26, %v1032_v17  ;;  %v916_v30 = vpop.f32.mrb[10].mxu1  ;;  %v420_v31 = vpop.f32.mrb[11].mxu0 }
  0xf9   : > { %v538_v32 = vmax.f32 %v490_v23, 0.0  ;;  %v520_v33 = vmax.f32 %v418_v24, 0.0  ;;  %v493_v34 = vadd.f32 %v916_v30, %v1032_v17  ;;  %v421_v35 = vadd.f32 %v1032_v17, %v420_v31  ;;  %v484_v36 = vpop.f32.mrb[11].mxu1 }
  0xfa   : > { %v848_v37 = vpack.c.bf16 %v522_v27, %v522_v27  ;;  %v536_v38 = vmax.f32 %v482_v28, 0.0  ;;  %v523_v39 = vmax.f32 %v429_v29, 0.0  ;;  %v485_v40 = vadd.f32 %v1032_v17, %v484_v36 }
  0xfb   : > { %v864_v41 = vpack.c.bf16 %v538_v32, %v538_v32  ;;  %v846_v42 = vpack.c.bf16 %v520_v33, %v520_v33  ;;  %v539_v43 = vmax.f32 %v493_v34, 0.0  ;;  %v521_v44 = vmax.f32 %v421_v35, 0.0 }
  0xfc   : > { %683 = vst.msk [vmem:[%s1044_s25 + $0x28] sm:$0xf] %vm672_vm1, %v848_v37  ;;  %v862_v45 = vpack.c.bf16 %v536_v38, %v536_v38  ;;  %v849_v46 = vpack.c.bf16 %v523_v39, %v523_v39  ;;  %v537_v47 = vmax.f32 %v485_v40, 0.0 }
  0xfd   : > { %699 = vst.msk [vmem:[%s1044_s25 + $0x68] sm:$0xf] %vm672_vm1, %v864_v41  ;;  %681 = vst.msk [vmem:[%s1044_s25 + $0x20] sm:$0xf] %vm672_vm1, %v846_v42  ;;  %v865_v48 = vpack.c.bf16 %v539_v43, %v539_v43  ;;  %v847_v49 = vpack.c.bf16 %v521_v44, %v521_v44  ;;  %v903_v50 = vpop.f32.mrb[12].mxu0 }
  0xfe   : > { %697 = vst.msk [vmem:[%s1044_s25 + $0x60] sm:$0xf] %vm672_vm1, %v862_v45  ;;  %684 = vst.msk [vmem:[%s1044_s25 + $0x2c] sm:$0xf] %vm672_vm1, %v849_v46  ;;  %v863_v51 = vpack.c.bf16 %v537_v47, %v537_v47  ;;  %v442_v52 = vadd.f32 %v903_v50, %v1032_v17  ;;  %v919_v53 = vpop.f32.mrb[12].mxu1  ;;  %v433_v54 = vpop.f32.mrb[13].mxu0 }
  0xff   : > { %700 = vst.msk [vmem:[%s1044_s25 + $0x6c] sm:$0xf] %vm672_vm1, %v865_v48  ;;  %682 = vst.msk [vmem:[%s1044_s25 + $0x24] sm:$0xf] %vm672_vm1, %v847_v49  ;;  %v506_v55 = vadd.f32 %v919_v53, %v1032_v17  ;;  %v434_v56 = vadd.f32 %v1032_v17, %v433_v54  ;;  %v497_v57 = vpop.f32.mrb[13].mxu1  ;;  %v904_v58 = vpop.f32.mrb[14].mxu0 }
 0x100   : > { %698 = vst.msk [vmem:[%s1044_s25 + $0x64] sm:$0xf] %vm672_vm1, %v863_v51  ;;  %v526_v59 = vmax.f32 %v442_v52, 0.0  ;;  %v498_v60 = vadd.f32 %v1032_v17, %v497_v57  ;;  %v445_v61 = vadd.f32 %v904_v58, %v1032_v17  ;;  %v920_v62 = vpop.f32.mrb[14].mxu1  ;;  %v436_v63 = vpop.f32.mrb[15].mxu0 }
 0x101   : > { %v542_v0 = vmax.f32 %v506_v55, 0.0  ;;  %v524_v1 = vmax.f32 %v434_v56, 0.0  ;;  %v509_v2 = vadd.f32 %v920_v62, %v1032_v17  ;;  %v437_v3 = vadd.f32 %v1032_v17, %v436_v63  ;;  %v500_v4 = vpop.f32.mrb[15].mxu1 }
 0x102   : > { %v852_v5 = vpack.c.bf16 %v526_v59, %v526_v59  ;;  %v540_v6 = vmax.f32 %v498_v60, 0.0  ;;  %v527_v7 = vmax.f32 %v445_v61, 0.0  ;;  %v501_v8 = vadd.f32 %v1032_v17, %v500_v4 }
 0x103   : > { %v868_v9 = vpack.c.bf16 %v542_v0, %v542_v0  ;;  %v850_v10 = vpack.c.bf16 %v524_v1, %v524_v1  ;;  %v543_v11 = vmax.f32 %v509_v2, 0.0  ;;  %v525_v12 = vmax.f32 %v437_v3, 0.0 }
 0x104   : > { %687 = vst.msk [vmem:[%s1044_s25 + $0x38] sm:$0xf] %vm672_vm1, %v852_v5  ;;  %v866_v13 = vpack.c.bf16 %v540_v6, %v540_v6  ;;  %v853_v14 = vpack.c.bf16 %v527_v7, %v527_v7  ;;  %v541_v15 = vmax.f32 %v501_v8, 0.0 }
 0x105   : > { %703 = vst.msk [vmem:[%s1044_s25 + $0x78] sm:$0xf] %vm672_vm1, %v868_v9  ;;  %685 = vst.msk [vmem:[%s1044_s25 + $0x30] sm:$0xf] %vm672_vm1, %v850_v10  ;;  %v869_v16 = vpack.c.bf16 %v543_v11, %v543_v11  ;;  %v851_v18 = vpack.c.bf16 %v525_v12, %v525_v12 }
 0x106   : > { %701 = vst.msk [vmem:[%s1044_s25 + $0x70] sm:$0xf] %vm672_vm1, %v866_v13  ;;  %688 = vst.msk [vmem:[%s1044_s25 + $0x3c] sm:$0xf] %vm672_vm1, %v853_v14  ;;  %v867_v17 = vpack.c.bf16 %v541_v15, %v541_v15 }
 0x107   : > { %704 = vst.msk [vmem:[%s1044_s25 + $0x7c] sm:$0xf] %vm672_vm1, %v869_v16  ;;  %686 = vst.msk [vmem:[%s1044_s25 + $0x34] sm:$0xf] %vm672_vm1, %v851_v18 }
 0x108   : > { %702 = vst.msk [vmem:[%s1044_s25 + $0x74] sm:$0xf] %vm672_vm1, %v867_v17 }
 0x109 PF: > { %s13_s12 = sadd.s32 1, %s954_s12  }
 0x10a   : > { %p10_p4 = scmp.ge.s32.totalorder %s13_s12, 4  }
 0x10c   :  { %12 = sbr.rel (!%p10_p4) target bundleno = 1 (0x1), region = 62 }

// kernel: se_resnext_bottleneck_pallas.4
= control target key start
LH: loop header
LB: loop body
LE: loop exit
PB: predicated region body
PF: predicated region fallthrough
CT: control target
= control target key end

     0   :  { %s3184_s15 = smov 0   ;;  %s3186_s16 = smov 0   ;;  %s3823_s0 = inlined_call_operand.vmem [shape: bf16[2,16,16,32], index: 0, kind: input, shape index: {}]   ;;  %s3824_s1 = inlined_call_operand.vmem [shape: bf16[1,9,32,32], index: 1, kind: input, shape index: {}]   ;;  %s3825_s2 = inlined_call_operand.vmem [shape: f32[1,32], index: 2, kind: input, shape index: {}]   ;;  %s3826_s3 = inlined_call_operand.vmem [shape: bf16[2,16,16,32], index: 3, kind: output, shape index: {0}]   ;;  %s3827_s4 = inlined_call_operand.vmem [shape: f32[2,1,32], index: 4, kind: output, shape index: {1}]  }
   0x1   :  { %s3188_s17 = smov 0   ;;  %s3190_s18 = smov 0  }
   0x2   :  { %s3192_s19 = smov 0  }
   0x3 LB: > { %s24_s20 = sadd.s32 1, %s3148_s17  ;;  %s27_s21 = sadd.s32 1, %s3152_s18  ;;  %s3156_s19 = sphi %s3192_s19, %s15_s19   ;;  %s3152_s18 = sphi %s3190_s18, %s3831_s18   ;;  %s3148_s17 = sphi %s3188_s17, %s3830_s17   ;;  %s3144_s16 = sphi %s3186_s16, %s3829_s16   ;;  %s3140_s15 = sphi %s3184_s15, %s3828_s15  }
   0x4   : > { %p25_p0 = scmp.ge.s32.totalorder %s24_s20, 2  ;;  %p2310_p1 = scmp.ge.s32.totalorder %s3156_s19, 1 }
   0x5   : > { %p179_p2 = scmp.lt.s32.totalorder %s3156_s19, 5 }
   0x6   : > { %s3833_s20 = smov (%p25_p0, %s24_s20), 0  ;;  %s3835_s21 = smov (!%p25_p0, %s27_s21), %s3152_s18 }
   0x7   : > { %p180_p3 = pnand %p2310_p1, %p179_p2  ;;  %p29_p4 = scmp.ge.s32.totalorder %s3835_s21, 2 }
   0x8   : > { %p213_p5 = scmp.lt.s32.totalorder (!%p180_p3), %s3144_s16, 1  ;;  %s3217_s22 = sshll.u32 (!%p180_p3), %s3140_s15, 3 }
   0x9   : > { %s3837_s21 = smov (%p29_p4, %s3835_s21), 0  ;;  %183 = sbr.rel (%p180_p3) target bundleno = 458 (0x1ca), region = 32 }
   0xa   : > { %p221_p6 = scmp.lt.s32.totalorder (!%p180_p3), %s3217_s22, 15  ;;  %p2317_p7 = scmp.ne.s32.totalorder (!%p180_p3), %s3140_s15, 0 }
  0x10   : > { %s3839_s16 = smov (!%p213_p5, %s3144_s16), 1  ;;  %236 = sbr.rel (%p2317_p7) target bundleno = 64 (0x40), region = 36 }
  0x11   : > { %s222_s23 = scalar_select %p221_p6, %s3217_s22, 15 }
  0x12   : > { %s2561_s24 = sshll.u32 %s3839_s16, 7  ;;  %s2315_s25 = sshll.u32 %s3839_s16, 5  ;;  %vm237_vm0 = vcmask (!%p2317_p7), 261120   ;;  %vm240_vm1 = vcmask (!%p2317_p7), 254976   ;;  %v3158_v3 = vmov (!%p2317_p7), 0.0   ;;  %vm390_vm2 = vcmask (!%p2317_p7), 253952  }
  0x13   : > { %s3224_s28 = scalar_lea.vmem %s3823_s0, %s2561_s24  ;;  %s2314_s29 = sshll.u32 %s222_s23, 1  ;;  %242 = vst.msk [vmem:[#allocation2 + $0x18] sm:$0xff] (!%p2317_p7), %vm237_vm0, %v3158_v3  ;;  %238 = vst.msk [vmem:[#allocation2] sm:$0xff] (!%p2317_p7), %vm237_vm0, %v3158_v3 }
  0x14   : > { %s225_s30 = sadd.s32 %s2315_s25, %s2314_s29  ;;  %s3229_s7 = scalar_lea.vmem %s3827_s4, %s3839_s16  ;;  %v3238_v0 = vld [vmem:[%s3224_s28] sm:$0xff] (!%p2317_p7)   ;;  %v3241_v1 = vld [vmem:[%s3224_s28 + $0x8] sm:$0xff] (!%p2317_p7)   ;;  %v3244_v2 = vld [vmem:[%s3224_s28 + $0x10] sm:$0xff] (!%p2317_p7)   ;;  %239 = vst.msk [vmem:[#allocation2 + $0x8] sm:$0xff] (!%p2317_p7), %vm237_vm0, %v3158_v3 }
  0x15   : > { %s2316_s8 = sshll.u32 %s225_s30, 2  ;;  %243 = vst.msk [vmem:[#allocation2 + $0x20] sm:$0xff] (!%p2317_p7), %vm237_vm0, %v3158_v3  ;;  %245 = vst.msk [vmem:[#allocation2 + $0x30] sm:$0xff] (!%p2317_p7), %vm237_vm0, %v3158_v3  ;;  %v2580_v4 = vunpack.c.l.bf16 (!%p2317_p7), %v3238_v0  ;;  %v2581_v5 = vunpack.c.h.bf16 (!%p2317_p7), %v3238_v0  ;;  %v2584_v6 = vunpack.c.l.bf16 (!%p2317_p7), %v3241_v1  ;;  %v2585_v7 = vunpack.c.h.bf16 (!%p2317_p7), %v3241_v1  ;;  %v2644_v8 = vld [vmem:[%s3224_s28 + $0x18] sm:$0xff] (!%p2317_p7)   ;;  %v2645_v9 = vld [vmem:[%s3224_s28 + $0x20] sm:$0xff] (!%p2317_p7)  }
  0x16   : > { %s3234_s11 = scalar_lea.vmem %s3826_s3, %s2316_s8  ;;  %246 = vst.msk [vmem:[#allocation2 + $0x38] sm:$0xff] (!%p2317_p7), %vm237_vm0, %v3158_v3  ;;  %248 = vst.msk [vmem:[#allocation2 + $0x48] sm:$0xff] (!%p2317_p7), %vm237_vm0, %v3158_v3  ;;  %v2646_v10 = vld [vmem:[%s3224_s28 + $0x28] sm:$0xff] (!%p2317_p7)   ;;  %v2588_v11 = vunpack.c.l.bf16 (!%p2317_p7), %v3244_v2  ;;  %v2589_v12 = vunpack.c.h.bf16 (!%p2317_p7), %v3244_v2  ;;  %v2592_v13 = vunpack.c.l.bf16 (!%p2317_p7), %v2644_v8  ;;  %v2593_v14 = vunpack.c.h.bf16 (!%p2317_p7), %v2644_v8  ;;  %v2647_v15 = vld [vmem:[%s3224_s28 + $0x30] sm:$0xff] (!%p2317_p7)  }
  0x17   : > { %249 = vst.msk [vmem:[#allocation2 + $0x50] sm:$0xff] %vm237_vm0, %v3158_v3  ;;  %251 = vst.msk [vmem:[#allocation2 + $0x60] sm:$0xff] %vm237_vm0, %v3158_v3  ;;  %v2648_v16 = vld [vmem:[%s3224_s28 + $0x38] sm:$0xff]   ;;  %v2649_v17 = vld [vmem:[%s3224_s28 + $0x40] sm:$0xff]   ;;  %v2596_v18 = vunpack.c.l.bf16 %v2645_v9  ;;  %v2597_v19 = vunpack.c.h.bf16 %v2645_v9  ;;  %v2600_v20 = vunpack.c.l.bf16 %v2646_v10  ;;  %v2601_v21 = vunpack.c.h.bf16 %v2646_v10 }
  0x18   : > { %252 = vst.msk [vmem:[#allocation2 + $0x68] sm:$0xff] %vm237_vm0, %v3158_v3  ;;  %254 = vst.msk [vmem:[#allocation2 + $0x78] sm:$0xff] %vm237_vm0, %v3158_v3  ;;  %v2650_v22 = vld [vmem:[%s3224_s28 + $0x48] sm:$0xff]   ;;  %v2651_v23 = vld [vmem:[%s3224_s28 + $0x50] sm:$0xff]   ;;  %v2604_v25 = vunpack.c.l.bf16 %v2647_v15  ;;  %v2605_v26 = vunpack.c.h.bf16 %v2647_v15  ;;  %v2608_v27 = vunpack.c.l.bf16 %v2648_v16  ;;  %v2609_v28 = vunpack.c.h.bf16 %v2648_v16 }
  0x19   : > { %255 = vst.msk [vmem:[#allocation2 + $0x80] sm:$0xff] %vm237_vm0, %v3158_v3  ;;  %257 = vst.msk [vmem:[#allocation2 + $0x90] sm:$0xff] %vm237_vm0, %v3158_v3  ;;  %v2652_v24 = vld [vmem:[%s3224_s28 + $0x58] sm:$0xff]   ;;  %v2653_v29 = vld [vmem:[%s3224_s28 + $0x60] sm:$0xff]   ;;  %v2612_v31 = vunpack.c.l.bf16 %v2649_v17  ;;  %v2613_v32 = vunpack.c.h.bf16 %v2649_v17  ;;  %v2616_v33 = vunpack.c.l.bf16 %v2650_v22  ;;  %v2617_v34 = vunpack.c.h.bf16 %v2650_v22 }
  0x1a   : > { %258 = vst.msk [vmem:[#allocation2 + $0x98] sm:$0xff] %vm237_vm0, %v3158_v3  ;;  %260 = vst.msk [vmem:[#allocation2 + $0xa8] sm:$0xff] %vm237_vm0, %v3158_v3  ;;  %v2654_v30 = vld [vmem:[%s3224_s28 + $0x68] sm:$0xff]   ;;  %v2655_v35 = vld [vmem:[%s3224_s28 + $0x70] sm:$0xff]   ;;  %v2620_v37 = vunpack.c.l.bf16 %v2651_v23  ;;  %v2621_v38 = vunpack.c.h.bf16 %v2651_v23  ;;  %v2624_v39 = vunpack.c.l.bf16 %v2652_v24  ;;  %v2625_v40 = vunpack.c.h.bf16 %v2652_v24 }
  0x1b   : > { %261 = vst.msk [vmem:[#allocation2 + $0xb0] sm:$0xff] %vm237_vm0, %v3158_v3  ;;  %263 = vst.msk [vmem:[#allocation2 + $0xc0] sm:$0xff] %vm237_vm0, %v3158_v3  ;;  %v2656_v36 = vld [vmem:[%s3224_s28 + $0x78] sm:$0xff]   ;;  %v2628_v41 = vunpack.c.l.bf16 %v2653_v29  ;;  %v2629_v42 = vunpack.c.h.bf16 %v2653_v29  ;;  %v2632_v43 = vunpack.c.l.bf16 %v2654_v30  ;;  %v2633_v44 = vunpack.c.h.bf16 %v2654_v30 }
  0x1c   : > { %264 = vst.msk [vmem:[#allocation2 + $0xc8] sm:$0xff] %vm237_vm0, %v3158_v3  ;;  %266 = vst.msk [vmem:[#allocation2 + $0xd8] sm:$0xff] %vm237_vm0, %v3158_v3  ;;  %v2636_v45 = vunpack.c.l.bf16 %v2655_v35  ;;  %v2637_v46 = vunpack.c.h.bf16 %v2655_v35  ;;  %v2640_v47 = vunpack.c.l.bf16 %v2656_v36  ;;  %v2641_v48 = vunpack.c.h.bf16 %v2656_v36 }
  0x1d   : > { %267 = vst.msk [vmem:[#allocation2 + $0xe0] sm:$0xff] %vm237_vm0, %v3158_v3  ;;  %269 = vst.msk [vmem:[#allocation2 + $0xf0] sm:$0xff] %vm237_vm0, %v3158_v3 }
  0x1e   : > { %270 = vst.msk [vmem:[#allocation2 + $0xf8] sm:$0xff] %vm237_vm0, %v3158_v3  ;;  %272 = vst.msk [vmem:[#allocation2 + $0x108] sm:$0xff] %vm237_vm0, %v3158_v3 }
  0x1f   : > { %273 = vst.msk [vmem:[#allocation2 + $0x110] sm:$0xff] %vm237_vm0, %v3158_v3  ;;  %275 = vst.msk [vmem:[#allocation2 + $0x120] sm:$0xff] %vm237_vm0, %v3158_v3 }
  0x20   : > { %276 = vst.msk [vmem:[#allocation2 + $0x128] sm:$0xff] %vm237_vm0, %v3158_v3  ;;  %278 = vst.msk [vmem:[#allocation2 + $0x138] sm:$0xff] %vm237_vm0, %v3158_v3 }
  0x21   : > { %279 = vst.msk [vmem:[#allocation2 + $0x140] sm:$0xff] %vm237_vm0, %v3158_v3  ;;  %281 = vst.msk [vmem:[#allocation2 + $0x150] sm:$0xff] %vm237_vm0, %v3158_v3 }
  0x22   : > { %282 = vst.msk [vmem:[#allocation2 + $0x158] sm:$0xff] %vm237_vm0, %v3158_v3  ;;  %284 = vst.msk [vmem:[#allocation2 + $0x168] sm:$0xff] %vm237_vm0, %v3158_v3 }
  0x23   : > { %285 = vst.msk [vmem:[#allocation2 + $0x170] sm:$0xff] %vm237_vm0, %v3158_v3  ;;  %287 = vst.msk [vmem:[#allocation2 + $0x180] sm:$0xff] %vm237_vm0, %v3158_v3 }
  0x24   : > { %288 = vst.msk [vmem:[#allocation2 + $0x188] sm:$0xff] %vm237_vm0, %v3158_v3  ;;  %290 = vst.msk [vmem:[#allocation2 + $0x198] sm:$0xff] %vm237_vm0, %v3158_v3 }
  0x25   : > { %291 = vst.msk [vmem:[#allocation2 + $0x1a0] sm:$0xff] %vm237_vm0, %v3158_v3  ;;  %358 = vst.msk [vmem:[#allocation2 + $0x19] sm:$0xff] %vm237_vm0, %v2580_v4 }
  0x26   : > { %244 = vst.msk [vmem:[#allocation2 + $0x28] sm:$0x3] %vm240_vm1, %v3158_v3  ;;  %241 = vst.msk [vmem:[#allocation2 + $0x10] sm:$0x3] %vm240_vm1, %v3158_v3 }
  0x27   : > { %247 = vst.msk [vmem:[#allocation2 + $0x40] sm:$0x3] %vm240_vm1, %v3158_v3  ;;  %250 = vst.msk [vmem:[#allocation2 + $0x58] sm:$0x3] %vm240_vm1, %v3158_v3 }
  0x28   : > { %253 = vst.msk [vmem:[#allocation2 + $0x70] sm:$0x3] %vm240_vm1, %v3158_v3  ;;  %256 = vst.msk [vmem:[#allocation2 + $0x88] sm:$0x3] %vm240_vm1, %v3158_v3 }
  0x29   : > { %259 = vst.msk [vmem:[#allocation2 + $0xa0] sm:$0x3] %vm240_vm1, %v3158_v3  ;;  %262 = vst.msk [vmem:[#allocation2 + $0xb8] sm:$0x3] %vm240_vm1, %v3158_v3 }
  0x2a   : > { %265 = vst.msk [vmem:[#allocation2 + $0xd0] sm:$0x3] %vm240_vm1, %v3158_v3  ;;  %268 = vst.msk [vmem:[#allocation2 + $0xe8] sm:$0x3] %vm240_vm1, %v3158_v3 }
  0x2b   : > { %271 = vst.msk [vmem:[#allocation2 + $0x100] sm:$0x3] %vm240_vm1, %v3158_v3  ;;  %274 = vst.msk [vmem:[#allocation2 + $0x118] sm:$0x3] %vm240_vm1, %v3158_v3 }
  0x2c   : > { %277 = vst.msk [vmem:[#allocation2 + $0x130] sm:$0x3] %vm240_vm1, %v3158_v3  ;;  %280 = vst.msk [vmem:[#allocation2 + $0x148] sm:$0x3] %vm240_vm1, %v3158_v3 }
  0x2d   : > { %283 = vst.msk [vmem:[#allocation2 + $0x160] sm:$0x3] %vm240_vm1, %v3158_v3  ;;  %286 = vst.msk [vmem:[#allocation2 + $0x178] sm:$0x3] %vm240_vm1, %v3158_v3 }
  0x2e   : > { %289 = vst.msk [vmem:[#allocation2 + $0x190] sm:$0x3] %vm240_vm1, %v3158_v3  ;;  %292 = vst.msk [vmem:[#allocation2 + $0x1a8] sm:$0x3] %vm240_vm1, %v3158_v3 }
  0x2f   : > { %359 = vst.msk [vmem:[#allocation2 + $0x21] sm:$0xff] %vm237_vm0, %v2581_v5  ;;  %360 = vst.msk [vmem:[#allocation2 + $0x31] sm:$0xff] %vm237_vm0, %v2584_v6 }
  0x30   : > { %361 = vst.msk [vmem:[#allocation2 + $0x39] sm:$0xff] %vm237_vm0, %v2585_v7  ;;  %362 = vst.msk [vmem:[#allocation2 + $0x49] sm:$0xff] %vm237_vm0, %v2588_v11 }
  0x31   : > { %363 = vst.msk [vmem:[#allocation2 + $0x51] sm:$0xff] %vm237_vm0, %v2589_v12  ;;  %364 = vst.msk [vmem:[#allocation2 + $0x61] sm:$0xff] %vm237_vm0, %v2592_v13 }
  0x32   : > { %365 = vst.msk [vmem:[#allocation2 + $0x69] sm:$0xff] %vm237_vm0, %v2593_v14  ;;  %366 = vst.msk [vmem:[#allocation2 + $0x79] sm:$0xff] %vm237_vm0, %v2596_v18 }
  0x33   : > { %367 = vst.msk [vmem:[#allocation2 + $0x81] sm:$0xff] %vm237_vm0, %v2597_v19  ;;  %368 = vst.msk [vmem:[#allocation2 + $0x91] sm:$0xff] %vm237_vm0, %v2600_v20 }
  0x34   : > { %369 = vst.msk [vmem:[#allocation2 + $0x99] sm:$0xff] %vm237_vm0, %v2601_v21  ;;  %370 = vst.msk [vmem:[#allocation2 + $0xa9] sm:$0xff] %vm237_vm0, %v2604_v25 }
  0x35   : > { %371 = vst.msk [vmem:[#allocation2 + $0xb1] sm:$0xff] %vm237_vm0, %v2605_v26  ;;  %372 = vst.msk [vmem:[#allocation2 + $0xc1] sm:$0xff] %vm237_vm0, %v2608_v27 }
  0x36   : > { %373 = vst.msk [vmem:[#allocation2 + $0xc9] sm:$0xff] %vm237_vm0, %v2609_v28  ;;  %374 = vst.msk [vmem:[#allocation2 + $0xd9] sm:$0xff] %vm237_vm0, %v2612_v31 }
  0x37   : > { %375 = vst.msk [vmem:[#allocation2 + $0xe1] sm:$0xff] %vm237_vm0, %v2613_v32  ;;  %376 = vst.msk [vmem:[#allocation2 + $0xf1] sm:$0xff] %vm237_vm0, %v2616_v33 }
  0x38   : > { %377 = vst.msk [vmem:[#allocation2 + $0xf9] sm:$0xff] %vm237_vm0, %v2617_v34  ;;  %378 = vst.msk [vmem:[#allocation2 + $0x109] sm:$0xff] %vm237_vm0, %v2620_v37 }
  0x39   : > { %379 = vst.msk [vmem:[#allocation2 + $0x111] sm:$0xff] %vm237_vm0, %v2621_v38  ;;  %380 = vst.msk [vmem:[#allocation2 + $0x121] sm:$0xff] %vm237_vm0, %v2624_v39 }
  0x3a   : > { %381 = vst.msk [vmem:[#allocation2 + $0x129] sm:$0xff] %vm237_vm0, %v2625_v40  ;;  %382 = vst.msk [vmem:[#allocation2 + $0x139] sm:$0xff] %vm237_vm0, %v2628_v41 }
  0x3b   : > { %383 = vst.msk [vmem:[#allocation2 + $0x141] sm:$0xff] %vm237_vm0, %v2629_v42  ;;  %384 = vst.msk [vmem:[#allocation2 + $0x151] sm:$0xff] %vm237_vm0, %v2632_v43 }
  0x3c   : > { %385 = vst.msk [vmem:[#allocation2 + $0x159] sm:$0xff] %vm237_vm0, %v2633_v44  ;;  %386 = vst.msk [vmem:[#allocation2 + $0x169] sm:$0xff] %vm237_vm0, %v2636_v45 }
  0x3d   : > { %387 = vst.msk [vmem:[#allocation2 + $0x171] sm:$0xff] %vm237_vm0, %v2637_v46  ;;  %388 = vst.msk [vmem:[#allocation2 + $0x181] sm:$0xff] %vm237_vm0, %v2640_v47 }
  0x3e   : > { %389 = vst.msk [vmem:[#allocation2 + $0x189] sm:$0xff] %vm237_vm0, %v2641_v48 }
  0x3f   : > { %391 = vst.msk [vmem:[%s3229_s7] sm:$0x1] %vm390_vm2, %v3158_v3 }
  0x40 PF: > { %v3100_v49 = vld [vmem:[%s3824_s1 + $0x10] sm:$0xff]   ;;  %s2319_s14 = smul.u32 192, %s3140_s15  ;;  %v3414_v50 = vld [vmem:[%s3824_s1 + $0x40] sm:$0xff]   ;;  %v3102_v51 = vld [vmem:[%s3824_s1 + $0x18] sm:$0xff]   ;;  %vm480_vm3 = vcmask 261120   ;;  %vm2090_vm5 = vcmask 257024  }
  0x41   : > { %2747 = vmatprep.subr.bf16.mxu1 %v3100_v49  ;;  %2827 = vmatprep.subr.bf16.mxu0 %v3414_v50  ;;  %v3423_v52 = vld [vmem:[%s3824_s1 + $0x48] sm:$0xff]   ;;  %v3104_v59 = vld [vmem:[%s3824_s1] sm:$0xff]   ;;  %v3105_v63 = vld [vmem:[%s3824_s1 + $0x50] sm:$0xff]   ;;  %vm2179_vm13 = vcmask 253952  }
  0x42   : > { %2748 = vmatpush3.bf16.msra.mxu1 %v3100_v49  ;;  %2828 = vmatpush3.bf16.msra.mxu0 %v3414_v50  ;;  %s3426_s15 = scalar_lea.vmem [#allocation2], %s2319_s14  ;;  %v3106_v3 = vld [vmem:[%s3824_s1 + $0x58] sm:$0xff]   ;;  %v3107_v7 = vld [vmem:[%s3824_s1 + $0x8] sm:$0xff]   ;;  %v3108_v9 = vld [vmem:[%s3824_s1 + $0x60] sm:$0xff]  }
  0x43   : > { %2749 = vmatprep.subr.bf16.mxu1 %v3102_v51  ;;  %2829 = vmatprep.subr.bf16.mxu0 %v3423_v52  ;;  %v3109_v16 = vld [vmem:[%s3824_s1 + $0x20] sm:$0xff]   ;;  %v3110_v26 = vld [vmem:[%s3824_s1 + $0x68] sm:$0xff]   ;;  %v3112_v34 = vld [vmem:[%s3824_s1 + $0x70] sm:$0xff]  }
  0x46   : > { %2750 = vmatpush3.bf16.msra.mxu1 %v3102_v51  ;;  %2830 = vmatpush3.bf16.msra.mxu0 %v3423_v52 }
  0x47   : > { %v439_v53 = vld [vmem:[%s3426_s15 + $0x1] sm:$0xff]  ;;  %v440_v54 = vld [vmem:[%s3426_s15 + $0x9] sm:$0xff]  ;;  %v2390_v55 = vld [vmem:[%s3426_s15 + $0x19] sm:$0xff]  ;;  %2767 = vmatprep.subr.bf16.mxu1 %v3104_v59  ;;  %2847 = vmatprep.subr.bf16.mxu0 %v3105_v63 }
  0x48   : > { %v455_v56 = vpack.c.bf16 %v440_v54, %v439_v53  ;;  %v2391_v57 = vld [vmem:[%s3426_s15 + $0x21] sm:$0xff]  ;;  %v2392_v60 = vld [vmem:[%s3426_s15 + $0x31] sm:$0xff]  ;;  %v2393_v61 = vld [vmem:[%s3426_s15 + $0x39] sm:$0xff] }
  0x49   : > { %v1110_v58 = vpack.c.bf16 %v2391_v57, %v2390_v55  ;;  %v3439_v62 = vpack.c.bf16 %v2393_v61, %v2392_v60  ;;  %v2394_v0 = vld [vmem:[%s3426_s15 + $0x49] sm:$0xff]  ;;  %v2395_v1 = vld [vmem:[%s3426_s15 + $0x51] sm:$0xff]  ;;  %v2396_v4 = vld [vmem:[%s3426_s15 + $0x61] sm:$0xff] }
  0x4a   : > { %2751 = vmatprep.mubr.msk.bf16.mxu1 %vm480_vm3, %v455_v56  ;;  %v3448_v2 = vpack.c.bf16 %v2395_v1, %v2394_v0  ;;  %v2397_v5 = vld [vmem:[%s3426_s15 + $0x69] sm:$0xff]  ;;  %v2420_v6 = vld [vmem:[%s3426_s15 + $0x1a] sm:$0xff]  ;;  %v2422_v14 = vld [vmem:[%s3426_s15 + $0x32] sm:$0xff] }
  0x4b   : > { %2831 = vmatprep.mubr.msk.bf16.mxu0 %vm480_vm3, %v1110_v58  ;;  %2752 = vmatmul.mubr.msk.bf16.vlgmr.msra.gmra.mrb[0].mxu1 %vm480_vm3, %v1110_v58  ;;  %v2421_v8 = vld [vmem:[%s3426_s15 + $0x22] sm:$0xff]  ;;  %v3470_v10 = vpack.c.bf16 %v2397_v5, %v2396_v4  ;;  %v449_v12 = vld [vmem:[%s3426_s15 + $0x79] sm:$0xff]  ;;  %v451_v17 = vld [vmem:[%s3426_s15 + $0x91] sm:$0xff] }
  0x4c   : > { %2832 = vmatmul.mubr.msk.bf16.vlgmr.msra.gmra.mrb[0].mxu0 %vm480_vm3, %v3439_v62  ;;  %2768 = vmatpush3.bf16.msra.mxu1 %v3104_v59  ;;  %v3472_v11 = vpack.c.bf16 %v2421_v8, %v2420_v6  ;;  %v450_v13 = vld [vmem:[%s3426_s15 + $0x81] sm:$0xff]  ;;  %v452_v18 = vld [vmem:[%s3426_s15 + $0x99] sm:$0xff]  ;;  %v2424_v19 = vld [vmem:[%s3426_s15 + $0x4a] sm:$0xff] }
  0x4d   : > { %2848 = vmatpush3.bf16.msra.mxu0 %v3105_v63  ;;  %2755 = vmatprep.mubr.msk.bf16.mxu1 %vm480_vm3, %v3439_v62  ;;  %v2423_v15 = vld [vmem:[%s3426_s15 + $0x3a] sm:$0xff]  ;;  %v2425_v20 = vld [vmem:[%s3426_s15 + $0x52] sm:$0xff]  ;;  %v3493_v21 = vpack.c.bf16 %v450_v13, %v449_v12  ;;  %v3497_v23 = vpack.c.bf16 %v452_v18, %v451_v17  ;;  %v453_v25 = vld [vmem:[%s3426_s15 + $0xa9] sm:$0xff] }
  0x4e   : > { %2835 = vmatprep.mubr.msk.bf16.mxu0 %vm480_vm3, %v3448_v2  ;;  %2849 = vmatprep.subr.bf16.mxu0 %v3106_v3  ;;  %v3495_v22 = vpack.c.bf16 %v2423_v15, %v2422_v14  ;;  %v3499_v24 = vpack.c.bf16 %v2425_v20, %v2424_v19  ;;  %v454_v27 = vld [vmem:[%s3426_s15 + $0xb1] sm:$0xff]  ;;  %v2426_v28 = vld [vmem:[%s3426_s15 + $0x62] sm:$0xff]  ;;  %v2428_v32 = vld [vmem:[%s3426_s15 + $0x7a] sm:$0xff] }
  0x4f   : > { %2769 = vmatprep.subr.bf16.mxu1 %v3107_v7  ;;  %v2427_v29 = vld [vmem:[%s3426_s15 + $0x6a] sm:$0xff]  ;;  %v411_v30 = vld [vmem:[%s3426_s15] sm:$0xff]  ;;  %v3523_v35 = vpack.c.bf16 %v454_v27, %v453_v25  ;;  %v413_v39 = vld [vmem:[%s3426_s15 + $0x18] sm:$0xff] }
  0x50   : > { %2770 = vmatpush3.bf16.msra.mxu1 %v3107_v7  ;;  %v412_v31 = vld [vmem:[%s3426_s15 + $0x8] sm:$0xff]  ;;  %v3525_v36 = vpack.c.bf16 %v2427_v29, %v2426_v28  ;;  %v414_v40 = vld [vmem:[%s3426_s15 + $0x20] sm:$0xff]  ;;  %v2430_v41 = vld [vmem:[%s3426_s15 + $0x92] sm:$0xff] }
  0x51   : > { %2850 = vmatpush3.bf16.msra.mxu0 %v3106_v3  ;;  %2787 = vmatprep.subr.bf16.mxu1 %v3109_v16  ;;  %v2429_v33 = vld [vmem:[%s3426_s15 + $0x82] sm:$0xff]  ;;  %v427_v37 = vpack.c.bf16 %v412_v31, %v411_v30  ;;  %v2431_v42 = vld [vmem:[%s3426_s15 + $0x9a] sm:$0xff]  ;;  %v415_v43 = vld [vmem:[%s3426_s15 + $0x30] sm:$0xff]  ;;  %v3544_v47 = vpack.c.bf16 %v414_v40, %v413_v39 }
  0x52   : > { %2867 = vmatprep.subr.bf16.mxu0 %v3108_v9  ;;  %v3527_v38 = vpack.c.bf16 %v2429_v33, %v2428_v32  ;;  %v416_v44 = vld [vmem:[%s3426_s15 + $0x38] sm:$0xff]  ;;  %v2432_v45 = vld [vmem:[%s3426_s15 + $0xaa] sm:$0xff]  ;;  %v3546_v48 = vpack.c.bf16 %v2431_v42, %v2430_v41  ;;  %v2434_v56 = vld [vmem:[%s3426_s15 + $0xc2] sm:$0xff] }
  0x53   : > { %2756 = vmatmul.mubr.msk.bf16.gmra.mrb[4].mxu1 %vm480_vm3, %v3448_v2  ;;  %v2433_v46 = vld [vmem:[%s3426_s15 + $0xb2] sm:$0xff]  ;;  %v3548_v49 = vpack.c.bf16 %v416_v44, %v415_v43  ;;  %v3111_v53 = vld [vmem:[%s3824_s1 + $0x28] sm:$0xff]   ;;  %v419_v58 = vld [vmem:[%s3426_s15 + $0x60] sm:$0xff] }
  0x54   : > { %2836 = vmatmul.mubr.msk.bf16.gmra.mrb[4].mxu0 %vm480_vm3, %v3470_v10  ;;  %2759 = vmatprep.mubr.msk.bf16.mxu1 %vm480_vm3, %v3470_v10  ;;  %v3550_v51 = vpack.c.bf16 %v2433_v46, %v2432_v45  ;;  %v417_v54 = vld [vmem:[%s3426_s15 + $0x48] sm:$0xff]  ;;  %v418_v55 = vld [vmem:[%s3426_s15 + $0x50] sm:$0xff]  ;;  %v421_v1 = vld [vmem:[%s3426_s15 + $0x78] sm:$0xff] }
  0x55   : > { %2851 = vmatprep.mubr.msk.bf16.mxu0 %vm480_vm3, %v3472_v11  ;;  %v2435_v57 = vld [vmem:[%s3426_s15 + $0xca] sm:$0xff]  ;;  %v3572_v61 = vpack.c.bf16 %v418_v55, %v417_v54  ;;  %v422_v3 = vld [vmem:[%s3426_s15 + $0x80] sm:$0xff]  ;;  %v424_v5 = vld [vmem:[%s3426_s15 + $0x98] sm:$0xff] }
  0x56   : > { %v420_v59 = vld [vmem:[%s3426_s15 + $0x68] sm:$0xff]  ;;  %v3113_v60 = vld [vmem:[%s3824_s1 + $0x30] sm:$0xff]   ;;  %v3574_v63 = vpack.c.bf16 %v2435_v57, %v2434_v56  ;;  %v3590_v6 = vpack.c.bf16 %v422_v3, %v421_v1  ;;  %v3114_v8 = vld [vmem:[%s3824_s1 + $0x78] sm:$0xff]  }
  0x57   : > { %v3576_v0 = vpack.c.bf16 %v420_v59, %v419_v58  ;;  %v423_v4 = vld [vmem:[%s3426_s15 + $0x90] sm:$0xff]  ;;  %v735_v13 = vld [vmem:[%s3426_s15 + $0x2] sm:$0xff]  ;;  %v3115_v25 = vld [vmem:[%s3824_s1 + $0x38] sm:$0xff]  }
  0x58   : > { %v3592_v7 = vpack.c.bf16 %v424_v5, %v423_v4  ;;  %v426_v12 = vld [vmem:[%s3426_s15 + $0xb0] sm:$0xff]  ;;  %v3116_v15 = vld [vmem:[%s3824_s1 + $0x80] sm:$0xff]   ;;  %v2465_v19 = vld [vmem:[%s3426_s15 + $0xc8] sm:$0xff] }
  0x59   : > { %v736_v14 = vld [vmem:[%s3426_s15 + $0xa] sm:$0xff]  ;;  %v2464_v18 = vld [vmem:[%s3426_s15 + $0xc0] sm:$0xff] }
  0x5a   : > { %v751_v17 = vpack.c.bf16 %v736_v14, %v735_v13  ;;  %v1475_v20 = vpack.c.bf16 %v2465_v19, %v2464_v18  ;;  %v2467_v27 = vld [vmem:[%s3426_s15 + $0xe0] sm:$0xff] }
  0x5b   : > { %2760 = vmatmul.mubr.msk.bf16.gmra.mrb[8].mxu1 %vm480_vm3, %v3493_v21  ;;  %v2497_v30 = vld [vmem:[%s3426_s15 + $0xe1] sm:$0xff]  ;;  %v3711_v39 = vld [vmem:[%s3825_s2] ss:$0 sm:$0xff] }
  0x5c   : > { %2852 = vmatmul.mubr.msk.bf16.vlgmr.msra.gmra.mrb[0].mxu0 %vm480_vm3, %v3495_v22  ;;  %2763 = vmatprep.mubr.msk.bf16.mxu1 %vm480_vm3, %v3497_v23 }
  0x5d   : > { %2868 = vmatpush3.bf16.msra.mxu0 %v3108_v9  ;;  %2855 = vmatprep.mubr.msk.bf16.mxu0 %vm480_vm3, %v3499_v24  ;;  %v425_v9 = vld [vmem:[%s3426_s15 + $0xa8] sm:$0xff] }
  0x5e   : > { %2869 = vmatprep.subr.bf16.mxu0 %v3110_v26 }
  0x61   : > { %2870 = vmatpush3.bf16.msra.mxu0 %v3110_v26  ;;  %v2466_v26 = vld [vmem:[%s3426_s15 + $0xd8] sm:$0xff] }
  0x62   : > { %2887 = vmatprep.subr.bf16.mxu0 %v3112_v34  ;;  %v1476_v28 = vpack.c.bf16 %v2467_v27, %v2466_v26 }
  0x63   : > { %2764 = vmatmul.mubr.msk.bf16.gmra.mrb[12].mxu1 %vm480_vm3, %v3523_v35 }
  0x64   : > { %2856 = vmatmul.mubr.msk.bf16.gmra.mrb[4].mxu0 %vm480_vm3, %v3525_v36  ;;  %2771 = vmatprep.mubr.msk.bf16.mxu1 %vm480_vm3, %v427_v37 }
  0x65   : > { %2859 = vmatprep.mubr.msk.bf16.mxu0 %vm480_vm3, %v3527_v38 }
  0x6b   : > { %2772 = vmatmul.mubr.msk.bf16.vlgmr.msra.gmra.mrb[0].mxu1 %vm480_vm3, %v3544_v47 }
  0x6c   : > { %2860 = vmatmul.mubr.msk.bf16.gmra.mrb[8].mxu0 %vm480_vm3, %v3546_v48  ;;  %2788 = vmatpush3.bf16.msra.mxu1 %v3109_v16  ;;  %v434_v16 = vpack.c.bf16 %v426_v12, %v425_v9 }
  0x6d   : > { %2775 = vmatprep.mubr.msk.bf16.mxu1 %vm480_vm3, %v3548_v49  ;;  %2863 = vmatprep.mubr.msk.bf16.mxu0 %vm480_vm3, %v3550_v51 }
  0x6e   : > { %2789 = vmatprep.subr.bf16.mxu1 %v3111_v53 }
  0x70   : > { %2790 = vmatpush3.bf16.msra.mxu1 %v3111_v53 }
  0x71   : > { %2807 = vmatprep.subr.bf16.mxu1 %v3113_v60 }
  0x73   : > { %2776 = vmatmul.mubr.msk.bf16.gmra.mrb[4].mxu1 %vm480_vm3, %v3572_v61 }
  0x74   : > { %2864 = vmatmul.mubr.msk.bf16.gmra.mrb[12].mxu0 %vm480_vm3, %v3574_v63  ;;  %2779 = vmatprep.mubr.msk.bf16.mxu1 %vm480_vm3, %v3576_v0 }
  0x75   : > { %2871 = vmatprep.mubr.msk.bf16.mxu0 %vm480_vm3, %v3548_v49 }
  0x7b   : > { %2780 = vmatmul.mubr.msk.bf16.gmra.mrb[8].mxu1 %vm480_vm3, %v3590_v6 }
  0x7c   : > { %2872 = vmatmul.mubr.msk.bf16.vlgmr.msra.gmra.mrb[0].mxu0 %vm480_vm3, %v3572_v61  ;;  %2783 = vmatprep.mubr.msk.bf16.mxu1 %vm480_vm3, %v3592_v7 }
  0x7d   : > { %2888 = vmatpush3.bf16.msra.mxu0 %v3112_v34  ;;  %2875 = vmatprep.mubr.msk.bf16.mxu0 %vm480_vm3, %v3576_v0 }
  0x7e   : > { %2889 = vmatprep.subr.bf16.mxu0 %v3114_v8 }
  0x81   : > { %2890 = vmatpush3.bf16.msra.mxu0 %v3114_v8 }
  0x82   : > { %2907 = vmatprep.subr.bf16.mxu0 %v3116_v15 }
  0x83   : > { %2784 = vmatmul.mubr.msk.bf16.gmra.mrb[12].mxu1 %vm480_vm3, %v434_v16 }
  0x84   : > { %2876 = vmatmul.mubr.msk.bf16.gmra.mrb[4].mxu0 %vm480_vm3, %v3590_v6  ;;  %2791 = vmatprep.mubr.msk.bf16.mxu1 %vm480_vm3, %v751_v17 }
  0x85   : > { %2879 = vmatprep.mubr.msk.bf16.mxu0 %vm480_vm3, %v3592_v7 }
  0x8b   : > { %2792 = vmatmul.mubr.msk.bf16.vlgmr.msra.gmra.mrb[0].mxu1 %vm480_vm3, %v3472_v11  ;;  %v3117_v11 = vld [vmem:[%s3824_s1 + $0x88] sm:$0xff]  }
  0x8c   : > { %2880 = vmatmul.mubr.msk.bf16.gmra.mrb[8].mxu0 %vm480_vm3, %v434_v16  ;;  %2808 = vmatpush3.bf16.msra.mxu1 %v3113_v60 }
  0x8d   : > { %2795 = vmatprep.mubr.msk.bf16.mxu1 %vm480_vm3, %v3495_v22  ;;  %2883 = vmatprep.mubr.msk.bf16.mxu0 %vm480_vm3, %v1475_v20 }
  0x8e   : > { %2809 = vmatprep.subr.bf16.mxu1 %v3115_v25 }
  0x90   : > { %2810 = vmatpush3.bf16.msra.mxu1 %v3115_v25 }
  0x91   : > { %2927 = vmatprep.subr.bf16.mxu1 %v3414_v50 }
  0x93   : > { %2796 = vmatmul.mubr.msk.bf16.gmra.mrb[4].mxu1 %vm480_vm3, %v3499_v24 }
  0x94   : > { %2884 = vmatmul.mubr.msk.bf16.gmra.mrb[12].mxu0 %vm480_vm3, %v1476_v28  ;;  %2799 = vmatprep.mubr.msk.bf16.mxu1 %vm480_vm3, %v3525_v36 }
  0x95   : > { %2891 = vmatprep.mubr.msk.bf16.mxu0 %vm480_vm3, %v3439_v62  ;;  %v2494_v62 = vld [vmem:[%s3426_s15 + $0xc1] sm:$0xff] }
  0x9b   : > { %2800 = vmatmul.mubr.msk.bf16.gmra.mrb[8].mxu1 %vm480_vm3, %v3527_v38 }
  0x9c   : > { %2892 = vmatmul.mubr.msk.bf16.vlgmr.msra.gmra.mrb[0].mxu0 %vm480_vm3, %v3448_v2  ;;  %2803 = vmatprep.mubr.msk.bf16.mxu1 %vm480_vm3, %v3546_v48  ;;  %v2495_v2 = vld [vmem:[%s3426_s15 + $0xc9] sm:$0xff] }
  0x9d   : > { %2908 = vmatpush3.bf16.msra.mxu0 %v3116_v15  ;;  %2895 = vmatprep.mubr.msk.bf16.mxu0 %vm480_vm3, %v3470_v10  ;;  %v1653_v29 = vpack.c.bf16 %v2495_v2, %v2494_v62  ;;  %v2496_v10 = vld [vmem:[%s3426_s15 + $0xd9] sm:$0xff] }
  0x9e   : > { %2909 = vmatprep.subr.bf16.mxu0 %v3117_v11  ;;  %v1654_v31 = vpack.c.bf16 %v2497_v30, %v2496_v10 }
  0xa1   : > { %2910 = vmatpush3.bf16.msra.mxu0 %v3117_v11 }
  0xa3   : > { %2804 = vmatmul.mubr.msk.bf16.gmra.mrb[12].mxu1 %vm480_vm3, %v3550_v51 }
  0xa4   : > { %2896 = vmatmul.mubr.msk.bf16.gmra.mrb[4].mxu0 %vm480_vm3, %v3493_v21  ;;  %2811 = vmatprep.mubr.msk.bf16.mxu1 %vm480_vm3, %v3544_v47 }
  0xa5   : > { %2899 = vmatprep.mubr.msk.bf16.mxu0 %vm480_vm3, %v3497_v23 }
  0xab   : > { %2812 = vmatmul.mubr.msk.bf16.vlgmr.msra.gmra.mrb[0].mxu1 %vm480_vm3, %v3548_v49 }
  0xac   : > { %2900 = vmatmul.mubr.msk.bf16.gmra.mrb[8].mxu0 %vm480_vm3, %v3523_v35  ;;  %2929 = vmatpush3.bf16.msra.mxu1 %v3414_v50  ;;  %v2526_v50 = vld [vmem:[%s3426_s15 + $0xda] sm:$0xff] }
  0xad   : > { %2815 = vmatprep.mubr.msk.bf16.mxu1 %vm480_vm3, %v3572_v61  ;;  %2903 = vmatprep.mubr.msk.bf16.mxu0 %vm480_vm3, %v1653_v29 }
  0xae   : > { %2928 = vmatprep.subr.bf16.mxu1 %v3423_v52 }
  0xb0   : > { %2930 = vmatpush3.bf16.msra.mxu1 %v3423_v52  ;;  %v2527_v52 = vld [vmem:[%s3426_s15 + $0xe2] sm:$0xff] }
  0xb3   : > { %2816 = vmatmul.mubr.msk.bf16.gmra.mrb[4].mxu1 %vm480_vm3, %v3576_v0 }
  0xb4   : > { %2904 = vmatmul.mubr.msk.bf16.gmra.mrb[12].mxu0 %vm480_vm3, %v1654_v31  ;;  %2819 = vmatprep.mubr.msk.bf16.mxu1 %vm480_vm3, %v3590_v6 }
  0xb5   : > { %2911 = vmatprep.mubr.msk.bf16.mxu0 %vm480_vm3, %v3495_v22  ;;  %v1832_v22 = vpack.c.bf16 %v2527_v52, %v2526_v50 }
  0xbb   : > { %2820 = vmatmul.mubr.msk.bf16.gmra.mrb[8].mxu1 %vm480_vm3, %v3592_v7 }
  0xbc   : > { %2912 = vmatmul.mubr.msk.bf16.vlgmr.msra.gmra.mrb[0].mxu0 %vm480_vm3, %v3499_v24  ;;  %2823 = vmatprep.mubr.msk.bf16.mxu1 %vm480_vm3, %v434_v16 }
  0xbd   : > { %2915 = vmatprep.mubr.msk.bf16.mxu0 %vm480_vm3, %v3525_v36 }
  0xc3   : > { %2824 = vmatmul.mubr.msk.bf16.gmra.mrb[12].mxu1 %vm480_vm3, %v1475_v20 }
  0xc4   : > { %2916 = vmatmul.mubr.msk.bf16.gmra.mrb[4].mxu0 %vm480_vm3, %v3527_v38  ;;  %2839 = vmatprep.mubr.msk.bf16.mxu1 %vm480_vm3, %v3493_v21  ;;  %v3706_v38 = vstv %s3217_s22 }
  0xc5   : > { %2919 = vmatprep.mubr.msk.bf16.mxu0 %vm480_vm3, %v3546_v48  ;;  %v394_v44 = vadd.s32 1, %v3706_v38  ;;  %vm401_vm4 = vcmp.lt.s32.totalorder %v3706_v38, 16  ;;  %v3724_v0 = vadd.s32 3, %v3706_v38  ;;  %v395_v3 = vadd.s32 2, %v3706_v38 }
  0xc7   : > { %vm402_vm6 = vcmp.lt.s32.totalorder %v394_v44, 16  ;;  %vm403_vm7 = vcmp.lt.s32.totalorder %v395_v3, 16  ;;  %vm404_vm8 = vcmp.lt.s32.totalorder %v3724_v0, 16 }
  0xcb   : > { %2840 = vmatmul.mubr.msk.bf16.vlgmr.msra.gmra.mrb[8].mxu1 %vm480_vm3, %v3497_v23 }
  0xcc   : > { %2920 = vmatmul.mubr.msk.bf16.gmra.mrb[8].mxu0 %vm480_vm3, %v3550_v51  ;;  %2843 = vmatprep.mubr.msk.bf16.mxu1 %vm480_vm3, %v3523_v35 }
  0xcd   : > { %2923 = vmatprep.mubr.msk.bf16.mxu0 %vm480_vm3, %v3574_v63 }
  0xd3   : > { %2844 = vmatmul.mubr.msk.bf16.gmra.mrb[12].mxu1 %vm480_vm3, %v1653_v29 }
  0xd4   : > { %2924 = vmatmul.mubr.msk.bf16.gmra.mrb[12].mxu0 %vm480_vm3, %v1832_v22 }
 0x17e   : > { %v2813_v21 = vpop.f32.mrb[0].mxu1 }
 0x17f   : > { %v1015_v24 = vpop.f32.mrb[1].mxu1 }
 0x180   : > { %v2814_v23 = vpop.f32.mrb[2].mxu1 }
 0x181   : > { %v1018_v32 = vpop.f32.mrb[3].mxu1 }
 0x186   : > { %v2817_v33 = vpop.f32.mrb[4].mxu1 }
 0x187   : > { %v1031_v34 = vpop.f32.mrb[5].mxu1 }
 0x188   : > { %v2818_v36 = vpop.f32.mrb[6].mxu1 }
 0x189   : > { %v1034_v37 = vpop.f32.mrb[7].mxu1 }
 0x18f   : > { %v2913_v35 = vpop.f32.mrb[0].mxu0 }
 0x190   : > { %v2931_v40 = vadd.f32 %v2913_v35, %v2813_v21  ;;  %v1908_v41 = vpop.f32.mrb[1].mxu0  ;;  %v398_v35 = vadd.s32 5, %v3706_v38 }
 0x191   : > { %v2932_v42 = vadd.f32 %v1908_v41, %v1015_v24  ;;  %v2914_v43 = vpop.f32.mrb[2].mxu0 }
 0x192   : > { %v1996_v45 = vadd.f32 %v2931_v40, %v3711_v39  ;;  %v2933_v46 = vadd.f32 %v2914_v43, %v2814_v23  ;;  %v1911_v47 = vpop.f32.mrb[3].mxu0  ;;  %vm406_vm10 = vcmp.lt.s32.totalorder %v398_v35, 16 }
 0x193   : > { %v1994_v48 = vadd.f32 %v2932_v42, %v3711_v39  ;;  %v2934_v49 = vadd.f32 %v1911_v47, %v1018_v32 }
 0x194   : > { %v2012_v51 = vmax.f32 %v1996_v45, 0.0  ;;  %v1997_v53 = vadd.f32 %v2933_v46, %v3711_v39 }
 0x195   : > { %v2010_v54 = vmax.f32 %v1994_v48, 0.0  ;;  %v1995_v55 = vadd.f32 %v2934_v49, %v3711_v39 }
 0x196   : > { %v2564_v56 = vpack.c.bf16 %v2012_v51, %v2012_v51  ;;  %v2013_v57 = vmax.f32 %v1997_v53, 0.0  ;;  %v2126_v5 = vsel %vm402_vm6, %v2012_v51, 0.0 }
 0x197   : > { %v2562_v58 = vpack.c.bf16 %v2010_v54, %v2010_v54  ;;  %v2124_v59 = vsel %vm401_vm4, %v2010_v54, 0.0  ;;  %v2011_v60 = vmax.f32 %v1995_v55, 0.0  ;;  %v2917_v61 = vpop.f32.mrb[4].mxu0  ;;  %v2143_v25 = vsel %vm480_vm3, %v2126_v5, 0.0 }
 0x198   : > { %2093 = vst.msk [vmem:[%s3234_s11 + $0x8] sm:$0xf] %vm2090_vm5, %v2564_v56  ;;  %v2565_v63 = vpack.c.bf16 %v2013_v57, %v2013_v57  ;;  %v2935_v1 = vadd.f32 %v2917_v61, %v2817_v33  ;;  %v1924_v4 = vpop.f32.mrb[5].mxu0  ;;  %v2140_v12 = vsel %vm480_vm3, %v2124_v59, 0.0  ;;  %v2127_v17 = vsel %vm402_vm6, %v2013_v57, 0.0 }
 0x199   : > { %2091 = vst.msk [vmem:[%s3234_s11] sm:$0xf] %vm2090_vm5, %v2562_v58  ;;  %v2563_v6 = vpack.c.bf16 %v2011_v60, %v2011_v60  ;;  %v2125_v7 = vsel %vm401_vm4, %v2011_v60, 0.0  ;;  %v2936_v8 = vadd.f32 %v1924_v4, %v1031_v34  ;;  %v2918_v9 = vpop.f32.mrb[6].mxu0  ;;  %v2145_v2 = vsel %vm480_vm3, %v2127_v17, 0.0 }
 0x19a   : > { %2094 = vst.msk [vmem:[%s3234_s11 + $0xc] sm:$0xf] %vm2090_vm5, %v2565_v63  ;;  %v2141_v13 = vsel %vm480_vm3, %v2125_v7, 0.0  ;;  %v2000_v14 = vadd.f32 %v2935_v1, %v3711_v39  ;;  %v2937_v15 = vadd.f32 %v2918_v9, %v2818_v36  ;;  %v1927_v16 = vpop.f32.mrb[7].mxu0  ;;  %v397_v33 = vadd.s32 4, %v3706_v38 }
 0x19b   : > { %2092 = vst.msk [vmem:[%s3234_s11 + $0x4] sm:$0xf] %vm2090_vm5, %v2563_v6  ;;  %v2142_v18 = vadd.f32 %v2141_v13, %v2140_v12  ;;  %v1998_v19 = vadd.f32 %v2936_v8, %v3711_v39  ;;  %v2938_v20 = vadd.f32 %v1927_v16, %v1034_v37 }
 0x19c   : > { %v2016_v26 = vmax.f32 %v2000_v14, 0.0  ;;  %v2001_v27 = vadd.f32 %v2937_v15, %v3711_v39  ;;  %vm405_vm9 = vcmp.lt.s32.totalorder %v397_v33, 16  ;;  %v399_v14 = vadd.s32 6, %v3706_v38 }
 0x19d   : > { %v2144_v28 = vadd.f32 %v2143_v25, %v2142_v18  ;;  %v2014_v11 = vmax.f32 %v1998_v19, 0.0  ;;  %v1999_v62 = vadd.f32 %v2938_v20, %v3711_v39 }
 0x19e   : > { %v2568_v29 = vpack.c.bf16 %v2016_v26, %v2016_v26  ;;  %v2017_v10 = vmax.f32 %v2001_v27, 0.0  ;;  %v2841_v30 = vpop.f32.mrb[8].mxu1  ;;  %v2130_v44 = vsel %vm404_vm8, %v2016_v26, 0.0  ;;  %vm407_vm11 = vcmp.lt.s32.totalorder %v399_v14, 16 }
 0x19f   : > { %v2566_v31 = vpack.c.bf16 %v2014_v11, %v2014_v11  ;;  %v2128_v50 = vsel %vm403_vm7, %v2014_v11, 0.0  ;;  %v2146_v52 = vadd.f32 %v2145_v2, %v2144_v28  ;;  %v2921_v22 = vpop.f32.mrb[8].mxu0  ;;  %v1225_v21 = vpop.f32.mrb[9].mxu1  ;;  %v2015_v32 = vmax.f32 %v1999_v62, 0.0 }
 0x1a0   : > { %2097 = vst.msk [vmem:[%s3234_s11 + $0x18] sm:$0xf] %vm2090_vm5, %v2568_v29  ;;  %v2147_v24 = vsel %vm480_vm3, %v2128_v50, 0.0  ;;  %v2569_v23 = vpack.c.bf16 %v2017_v10, %v2017_v10  ;;  %v1940_v34 = vpop.f32.mrb[9].mxu0  ;;  %v2842_v36 = vpop.f32.mrb[10].mxu1  ;;  %v2939_v40 = vadd.f32 %v2921_v22, %v2841_v30  ;;  %v2131_v55 = vsel %vm404_vm8, %v2017_v10, 0.0 }
 0x1a1   : > { %2095 = vst.msk [vmem:[%s3234_s11 + $0x10] sm:$0xf] %vm2090_vm5, %v2566_v31  ;;  %v2148_v37 = vadd.f32 %v2147_v24, %v2146_v52  ;;  %v2940_v41 = vadd.f32 %v1940_v34, %v1225_v21  ;;  %v2922_v42 = vpop.f32.mrb[10].mxu0  ;;  %v1228_v43 = vpop.f32.mrb[11].mxu1  ;;  %v2567_v45 = vpack.c.bf16 %v2015_v32, %v2015_v32  ;;  %v2129_v46 = vsel %vm403_vm7, %v2015_v32, 0.0 }
 0x1a2   : > { %2098 = vst.msk [vmem:[%s3234_s11 + $0x1c] sm:$0xf] %vm2090_vm5, %v2569_v23  ;;  %v2941_v47 = vadd.f32 %v2922_v42, %v2842_v36  ;;  %v1943_v48 = vpop.f32.mrb[11].mxu0  ;;  %v2149_v49 = vsel %vm480_vm3, %v2129_v46, 0.0  ;;  %v2004_v51 = vadd.f32 %v2939_v40, %v3711_v39  ;;  %v2151_v58 = vsel %vm480_vm3, %v2130_v44, 0.0 }
 0x1a3   : > { %v2002_v53 = vadd.f32 %v2940_v41, %v3711_v39  ;;  %v2942_v54 = vadd.f32 %v1943_v48, %v1228_v43  ;;  %2096 = vst.msk [vmem:[%s3234_s11 + $0x14] sm:$0xf] %vm2090_vm5, %v2567_v45  ;;  %v2150_v56 = vadd.f32 %v2149_v49, %v2148_v37  ;;  %v2153_v0 = vsel %vm480_vm3, %v2131_v55, 0.0 }
 0x1a4   : > { %v2005_v57 = vadd.f32 %v2941_v47, %v3711_v39  ;;  %v2020_v59 = vmax.f32 %v2004_v51, 0.0  ;;  %v400_v28 = vadd.s32 7, %v3706_v38 }
 0x1a5   : > { %v2018_v60 = vmax.f32 %v2002_v53, 0.0  ;;  %v2003_v61 = vadd.f32 %v2942_v54, %v3711_v39  ;;  %v2152_v63 = vadd.f32 %v2151_v58, %v2150_v56 }
 0x1a6   : > { %v2021_v1 = vmax.f32 %v2005_v57, 0.0  ;;  %v2845_v3 = vpop.f32.mrb[12].mxu1  ;;  %v2572_v4 = vpack.c.bf16 %v2020_v59, %v2020_v59  ;;  %v2134_v26 = vsel %vm406_vm10, %v2020_v59, 0.0  ;;  %vm408_vm12 = vcmp.lt.s32.totalorder %v400_v28, 16 }
 0x1a7   : > { %v2570_v5 = vpack.c.bf16 %v2018_v60, %v2018_v60  ;;  %v2132_v6 = vsel %vm405_vm9, %v2018_v60, 0.0  ;;  %v2925_v7 = vpop.f32.mrb[12].mxu0  ;;  %v1241_v8 = vpop.f32.mrb[13].mxu1  ;;  %v2154_v9 = vadd.f32 %v2153_v0, %v2152_v63  ;;  %v2019_v17 = vmax.f32 %v2003_v61, 0.0 }
 0x1a8   : > { %v2155_v12 = vsel %vm480_vm3, %v2132_v6, 0.0  ;;  %v2573_v13 = vpack.c.bf16 %v2021_v1, %v2021_v1  ;;  %v1956_v15 = vpop.f32.mrb[13].mxu0  ;;  %v2846_v16 = vpop.f32.mrb[14].mxu1  ;;  %2101 = vst.msk [vmem:[%s3234_s11 + $0x28] sm:$0xf] %vm2090_vm5, %v2572_v4  ;;  %v2943_v18 = vadd.f32 %v2925_v7, %v2845_v3  ;;  %v2135_v22 = vsel %vm406_vm10, %v2021_v1, 0.0 }
 0x1a9   : > { %2099 = vst.msk [vmem:[%s3234_s11 + $0x20] sm:$0xf] %vm2090_vm5, %v2570_v5  ;;  %v2944_v19 = vadd.f32 %v1956_v15, %v1241_v8  ;;  %v2926_v20 = vpop.f32.mrb[14].mxu0  ;;  %v1244_v25 = vpop.f32.mrb[15].mxu1  ;;  %v2156_v27 = vadd.f32 %v2155_v12, %v2154_v9  ;;  %v2571_v2 = vpack.c.bf16 %v2019_v17, %v2019_v17  ;;  %v2133_v29 = vsel %vm405_vm9, %v2019_v17, 0.0 }
 0x1aa   : > { %2102 = vst.msk [vmem:[%s3234_s11 + $0x2c] sm:$0xf] %vm2090_vm5, %v2573_v13  ;;  %v2945_v11 = vadd.f32 %v2926_v20, %v2846_v16  ;;  %v1959_v62 = vpop.f32.mrb[15].mxu0  ;;  %v2008_v10 = vadd.f32 %v2943_v18, %v3711_v39  ;;  %v2157_v31 = vsel %vm480_vm3, %v2133_v29, 0.0  ;;  %v2159_v23 = vsel %vm480_vm3, %v2134_v26, 0.0 }
 0x1ab   : > { %v2006_v30 = vadd.f32 %v2944_v19, %v3711_v39  ;;  %v2946_v52 = vadd.f32 %v1959_v62, %v1244_v25  ;;  %2100 = vst.msk [vmem:[%s3234_s11 + $0x24] sm:$0xf] %vm2090_vm5, %v2571_v2  ;;  %v2158_v38 = vadd.f32 %v2157_v31, %v2156_v27  ;;  %v2161_v40 = vsel %vm480_vm3, %v2135_v22, 0.0  ;;  %v2107_v1 = vld [vmem:[%s3229_s7] sm:$0x1] }
 0x1ac   : > { %v2009_v50 = vadd.f32 %v2945_v11, %v3711_v39  ;;  %v2024_v21 = vmax.f32 %v2008_v10, 0.0 }
 0x1ad   : > { %v2022_v24 = vmax.f32 %v2006_v30, 0.0  ;;  %v2007_v33 = vadd.f32 %v2946_v52, %v3711_v39  ;;  %v2160_v34 = vadd.f32 %v2159_v23, %v2158_v38 }
 0x1ae   : > { %v2025_v32 = vmax.f32 %v2009_v50, 0.0  ;;  %v2576_v36 = vpack.c.bf16 %v2024_v21, %v2024_v21  ;;  %v2138_v39 = vsel %vm408_vm12, %v2024_v21, 0.0 }
 0x1af   : > { %v2574_v37 = vpack.c.bf16 %v2022_v24, %v2022_v24  ;;  %v2136_v35 = vsel %vm407_vm11, %v2022_v24, 0.0  ;;  %v2162_v42 = vadd.f32 %v2161_v40, %v2160_v34  ;;  %v2023_v44 = vmax.f32 %v2007_v33, 0.0 }
 0x1b0   : > { %v2577_v41 = vpack.c.bf16 %v2025_v32, %v2025_v32  ;;  %2105 = vst.msk [vmem:[%s3234_s11 + $0x38] sm:$0xf] %vm2090_vm5, %v2576_v36  ;;  %v2163_v43 = vsel %vm480_vm3, %v2136_v35, 0.0  ;;  %v2139_v49 = vsel %vm408_vm12, %v2025_v32, 0.0  ;;  %v2167_v53 = vsel %vm480_vm3, %v2138_v39, 0.0 }
 0x1b1   : > { %2103 = vst.msk [vmem:[%s3234_s11 + $0x30] sm:$0xf] %vm2090_vm5, %v2574_v37  ;;  %v2164_v45 = vadd.f32 %v2163_v43, %v2162_v42  ;;  %v2575_v46 = vpack.c.bf16 %v2023_v44, %v2023_v44  ;;  %v2137_v47 = vsel %vm407_vm11, %v2023_v44, 0.0  ;;  %v2169_v55 = vsel %vm480_vm3, %v2139_v49, 0.0 }
 0x1b2   : > { %2106 = vst.msk [vmem:[%s3234_s11 + $0x3c] sm:$0xf] %vm2090_vm5, %v2577_v41  ;;  %v2165_v48 = vsel %vm480_vm3, %v2137_v47, 0.0 }
 0x1b3   : > { %2104 = vst.msk [vmem:[%s3234_s11 + $0x34] sm:$0xf] %vm2090_vm5, %v2575_v46  ;;  %v2166_v51 = vadd.f32 %v2165_v48, %v2164_v45 }
 0x1b5   : > { %v2168_v54 = vadd.f32 %v2167_v53, %v2166_v51 }
 0x1b7   : > { %v2170_v56 = vadd.f32 %v2169_v55, %v2168_v54 }
 0x1b9   : > { %v2171_v57 = vrot.slane %v2170_v56, 4 }
 0x1bb   : > { %v2172_v58 = vadd.f32 %v2171_v57, %v2170_v56 }
 0x1bd   : > { %v2173_v59 = vrot.slane %v2172_v58, 2 }
 0x1bf   : > { %v2174_v60 = vadd.f32 %v2173_v59, %v2172_v58 }
 0x1c1   : > { %v2175_v61 = vrot.slane %v2174_v60, 1 }
 0x1c3   : > { %v2176_v63 = vadd.f32 %v2175_v61, %v2174_v60 }
 0x1c5   : > { %v2177_v3 = vmul.f32 0.00390625, %v2176_v63 }
 0x1c7   : > { %v2178_v0 = vadd.f32 %v2177_v3, %v2107_v1 }
 0x1c9   : > { %2180 = vst.msk [vmem:[%s3229_s7] sm:$0x1] %vm2179_vm13, %v2178_v0 }
 0x1ca PF: > { %s15_s19 = sadd.s32 1, %s3156_s19   ;;  %s3828_s15 = smov %s3148_s17 }
 0x1cb   : > { %p12_p8 = scmp.ge.s32.totalorder %s15_s19, 6   ;;  %s3829_s16 = smov %s3152_s18 }
 0x1cc   : > { %s3830_s17 = smov %s3833_s20  ;;  %s3831_s18 = smov %s3837_s21 }
 0x1cd   :  { %14 = sbr.rel (!%p12_p8) target bundleno = 3 (0x3), region = 90 }

// kernel: se_resnext_bottleneck_pallas.5
= control target key start
LH: loop header
LB: loop body
LE: loop exit
PB: predicated region body
PF: predicated region fallthrough
CT: control target
= control target key end

     0   :  { %s1298_s24 = smov 0   ;;  %s1300_s25 = smov 0   ;;  %s1503_s0 = inlined_call_operand.vmem [shape: bf16[2,256,32], index: 0, kind: input, shape index: {}]   ;;  %s1504_s1 = inlined_call_operand.vmem [shape: bf16[2,256,16], index: 1, kind: input, shape index: {}]   ;;  %s1505_s2 = inlined_call_operand.vmem [shape: f32[2,1,32], index: 2, kind: input, shape index: {}]   ;;  %s1506_s3 = inlined_call_operand.vmem [shape: bf16[32,32], index: 3, kind: input, shape index: {}]   ;;  %s1507_s4 = inlined_call_operand.vmem [shape: f32[1,32], index: 4, kind: input, shape index: {}]   ;;  %s1508_s5 = inlined_call_operand.vmem [shape: bf16[16,32], index: 5, kind: input, shape index: {}]   ;;  %s1509_s6 = inlined_call_operand.vmem [shape: f32[1,32], index: 6, kind: input, shape index: {}]   ;;  %s1510_s7 = inlined_call_operand.vmem [shape: bf16[2,256,32], index: 7, kind: output, shape index: {}]  }
   0x1   :  { %s1302_s26 = smov 0   ;;  %s1304_s27 = smov 0  }
   0x2   :  { %s1306_s28 = smov 0  }
   0x3 LB: > { %s26_s29 = sadd.s32 1, %s1248_s26  ;;  %s29_s30 = sadd.s32 1, %s1252_s27  ;;  %s1256_s28 = sphi %s1306_s28, %s17_s28   ;;  %s1252_s27 = sphi %s1304_s27, %s1514_s27   ;;  %s1248_s26 = sphi %s1302_s26, %s1513_s26   ;;  %s1244_s25 = sphi %s1300_s25, %s1512_s25   ;;  %s1240_s24 = sphi %s1298_s24, %s1511_s24  }
   0x4   : > { %p27_p0 = scmp.ge.s32.totalorder %s26_s29, 2  ;;  %p1020_p1 = scmp.ge.s32.totalorder %s1256_s28, 1 }
   0x5   : > { %p283_p2 = scmp.lt.s32.totalorder %s1256_s28, 5 }
   0x6   : > { %s1516_s29 = smov (%p27_p0, %s26_s29), 0  ;;  %s1518_s30 = smov (!%p27_p0, %s29_s30), %s1252_s27 }
   0x7   : > { %p284_p3 = pnand %p1020_p1, %p283_p2  ;;  %p31_p4 = scmp.ge.s32.totalorder %s1518_s30, 2 }
   0x8   : > { %v1199_v0 = vld [vmem:[%s1506_s3] sm:$0xff] (!%p284_p3)   ;;  %s1021_s10 = sshll.u32 (!%p284_p3), %s1240_s24, 4  ;;  %v1200_v1 = vld [vmem:[%s1506_s3 + $0x8] sm:$0xff] (!%p284_p3)   ;;  %p336_p5 = scmp.lt.s32.totalorder (!%p284_p3), %s1244_s25, 1  ;;  %vm448_vm0 = vcmask (!%p284_p3), 261120   ;;  %vm641_vm1 = vcmask (!%p284_p3), 130048  }
   0x9   : > { %s1520_s30 = smov (%p31_p4, %s1518_s30), 0  ;;  %287 = sbr.rel (%p284_p3) target bundleno = 273 (0x111), region = 48 }
   0xa   : > { %1121 = vmatprep.subr.bf16.mxu0 (!%p284_p3), %v1199_v0  ;;  %v1201_v2 = vld [vmem:[%s1508_s5] sm:$0xff] (!%p284_p3)   ;;  %p338_p6 = scmp.lt.s32.totalorder (!%p284_p3), %s1021_s10, 31  ;;  %vm882_vm2 = vcmask (!%p284_p3), 257024  }
   0xb   : > { %1122 = vmatpush3.bf16.msra.mxu0 (!%p284_p3), %v1199_v0  ;;  %1141 = vmatprep.subr.bf16.mxu1 (!%p284_p3), %v1201_v2  ;;  %v1393_v19 = vld [vmem:[%s1507_s4] ss:$0 sm:$0xff] (!%p284_p3) }
   0xc   : > { %1123 = vmatprep.subr.bf16.mxu0 (!%p284_p3), %v1200_v1  ;;  %1142 = vmatpush3.bf16.msra.mxu1 (!%p284_p3), %v1201_v2  ;;  %v1398_v20 = vld [vmem:[%s1509_s6] ss:$0 sm:$0xff] (!%p284_p3) }
   0xf   : > { %1124 = vmatpush3.bf16.msra.mxu0 (!%p284_p3), %v1200_v1 }
  0x10   : > { %s1522_s25 = smov (!%p336_p5, %s1244_s25), 1  ;;  %s1524_s10 = smov (!%p338_p6, %s1021_s10), 31 }
  0x11   : > { %s1022_s15 = sshll.u32 %s1522_s25, 5  ;;  %s357_s9 = scalar_lea.vmem %s1505_s2, %s1522_s25 }
  0x12   : > { %s341_s16 = sadd.s32 %s1022_s15, %s1524_s10  ;;  %v1400_v22 = vld [vmem:[%s357_s9] ss:$0 sm:$0xff] }
  0x13   : > { %s1340_s17 = sshll.u32 %s341_s16, 2 }
  0x14   : > { %s1346_s20 = scalar_lea.vmem %s1503_s0, %s1340_s17  ;;  %s1353_s23 = scalar_lea.vmem %s1504_s1, %s1340_s17 }
  0x15   : > { %v1202_v3 = vld [vmem:[%s1346_s20] sm:$0xff]   ;;  %v1204_v5 = vld [vmem:[%s1346_s20 + $0x8] sm:$0xff]   ;;  %v1206_v7 = vld [vmem:[%s1346_s20 + $0x10] sm:$0xff]   ;;  %s1418_s15 = scalar_lea.vmem %s1510_s7, %s1340_s17 }
  0x16   : > { %v1203_v4 = vld [vmem:[%s1353_s23] sm:$0xff]   ;;  %1125 = vmatprep.mubr.msk.bf16.mxu0 %vm448_vm0, %v1202_v3  ;;  %v1205_v6 = vld [vmem:[%s1353_s23 + $0x8] sm:$0xff]   ;;  %v1207_v8 = vld [vmem:[%s1353_s23 + $0x10] sm:$0xff]  }
  0x17   : > { %1143 = vmatprep.mubr.msk.bf16.mxu1 %vm641_vm1, %v1203_v4  ;;  %1126 = vmatmul.mubr.msk.bf16.vlgmr.msra.gmra.mrb[0].mxu0 %vm448_vm0, %v1204_v5  ;;  %v1208_v9 = vld [vmem:[%s1346_s20 + $0x18] sm:$0xff]   ;;  %v1210_v11 = vld [vmem:[%s1346_s20 + $0x20] sm:$0xff]   ;;  %v1212_v13 = vld [vmem:[%s1346_s20 + $0x28] sm:$0xff]  }
  0x18   : > { %1144 = vmatmul.mubr.msk.bf16.vlgmr.msra.gmra.mrb[0].mxu1 %vm641_vm1, %v1205_v6  ;;  %1129 = vmatprep.mubr.msk.bf16.mxu0 %vm448_vm0, %v1206_v7  ;;  %v1209_v10 = vld [vmem:[%s1353_s23 + $0x18] sm:$0xff]   ;;  %v1211_v12 = vld [vmem:[%s1353_s23 + $0x20] sm:$0xff]   ;;  %v1213_v14 = vld [vmem:[%s1353_s23 + $0x28] sm:$0xff]  }
  0x19   : > { %1147 = vmatprep.mubr.msk.bf16.mxu1 %vm641_vm1, %v1207_v8  ;;  %v1214_v15 = vld [vmem:[%s1346_s20 + $0x30] sm:$0xff]   ;;  %v1216_v17 = vld [vmem:[%s1346_s20 + $0x38] sm:$0xff]  }
  0x1a   : > { %v1215_v16 = vld [vmem:[%s1353_s23 + $0x30] sm:$0xff]   ;;  %v1217_v18 = vld [vmem:[%s1353_s23 + $0x38] sm:$0xff]  }
  0x1f   : > { %1130 = vmatmul.mubr.msk.bf16.gmra.mrb[4].mxu0 %vm448_vm0, %v1208_v9 }
  0x20   : > { %1148 = vmatmul.mubr.msk.bf16.gmra.mrb[4].mxu1 %vm641_vm1, %v1209_v10  ;;  %1133 = vmatprep.mubr.msk.bf16.mxu0 %vm448_vm0, %v1210_v11 }
  0x21   : > { %1151 = vmatprep.mubr.msk.bf16.mxu1 %vm641_vm1, %v1211_v12 }
  0x27   : > { %1134 = vmatmul.mubr.msk.bf16.gmra.mrb[8].mxu0 %vm448_vm0, %v1212_v13 }
  0x28   : > { %1152 = vmatmul.mubr.msk.bf16.gmra.mrb[8].mxu1 %vm641_vm1, %v1213_v14  ;;  %1137 = vmatprep.mubr.msk.bf16.mxu0 %vm448_vm0, %v1214_v15 }
  0x29   : > { %1155 = vmatprep.mubr.msk.bf16.mxu1 %vm641_vm1, %v1215_v16 }
  0x2f   : > { %1138 = vmatmul.mubr.msk.bf16.gmra.mrb[12].mxu0 %vm448_vm0, %v1216_v17 }
  0x30   : > { %1156 = vmatmul.mubr.msk.bf16.gmra.mrb[12].mxu1 %vm641_vm1, %v1217_v18 }
  0xea   : > { %v1127_v21 = vpop.f32.mrb[0].mxu0 }
  0xeb   : > { %v516_v23 = vadd.f32 %v1127_v21, %v1393_v19  ;;  %v1145_v24 = vpop.f32.mrb[0].mxu1  ;;  %v507_v25 = vpop.f32.mrb[1].mxu0 }
  0xec   : > { %v709_v26 = vadd.f32 %v1145_v24, %v1398_v20  ;;  %v508_v27 = vadd.f32 %v1393_v19, %v507_v25  ;;  %v700_v28 = vpop.f32.mrb[1].mxu1  ;;  %v1128_v29 = vpop.f32.mrb[2].mxu0 }
  0xed   : > { %v772_v30 = vmul.f32 %v1400_v22, %v516_v23  ;;  %v701_v31 = vadd.f32 %v1398_v20, %v700_v28  ;;  %v519_v32 = vadd.f32 %v1128_v29, %v1393_v19  ;;  %v1146_v33 = vpop.f32.mrb[2].mxu1  ;;  %v510_v34 = vpop.f32.mrb[3].mxu0 }
  0xee   : > { %v770_v35 = vmul.f32 %v1400_v22, %v508_v27  ;;  %v511_v36 = vadd.f32 %v1393_v19, %v510_v34  ;;  %v703_v37 = vpop.f32.mrb[3].mxu1  ;;  %v712_v40 = vadd.f32 %v1146_v33, %v1398_v20 }
  0xef   : > { %v788_v38 = vadd.f32 %v772_v30, %v709_v26  ;;  %v773_v39 = vmul.f32 %v1400_v22, %v519_v32  ;;  %v704_v43 = vadd.f32 %v1398_v20, %v703_v37 }
  0xf0   : > { %v786_v41 = vadd.f32 %v770_v35, %v701_v31  ;;  %v771_v42 = vmul.f32 %v1400_v22, %v511_v36 }
  0xf1   : > { %v804_v44 = vmax.f32 %v788_v38, 0.0  ;;  %v789_v45 = vadd.f32 %v773_v39, %v712_v40 }
  0xf2   : > { %v802_v46 = vmax.f32 %v786_v41, 0.0  ;;  %v787_v47 = vadd.f32 %v771_v42, %v704_v43  ;;  %v1131_v48 = vpop.f32.mrb[4].mxu0 }
  0xf3   : > { %v1088_v49 = vpack.c.bf16 %v804_v44, %v804_v44  ;;  %v805_v50 = vmax.f32 %v789_v45, 0.0  ;;  %v532_v51 = vadd.f32 %v1131_v48, %v1393_v19  ;;  %v1149_v52 = vpop.f32.mrb[4].mxu1  ;;  %v523_v53 = vpop.f32.mrb[5].mxu0 }
  0xf4   : > { %v1086_v54 = vpack.c.bf16 %v802_v46, %v802_v46  ;;  %v803_v55 = vmax.f32 %v787_v47, 0.0  ;;  %v725_v56 = vadd.f32 %v1149_v52, %v1398_v20  ;;  %v524_v57 = vadd.f32 %v1393_v19, %v523_v53  ;;  %v716_v58 = vpop.f32.mrb[5].mxu1  ;;  %v1132_v59 = vpop.f32.mrb[6].mxu0 }
  0xf5   : > { %885 = vst.msk [vmem:[%s1418_s15 + $0x8] sm:$0xf] %vm882_vm2, %v1088_v49  ;;  %v1089_v60 = vpack.c.bf16 %v805_v50, %v805_v50  ;;  %v776_v61 = vmul.f32 %v1400_v22, %v532_v51  ;;  %v717_v62 = vadd.f32 %v1398_v20, %v716_v58  ;;  %v535_v63 = vadd.f32 %v1132_v59, %v1393_v19  ;;  %v1150_v0 = vpop.f32.mrb[6].mxu1  ;;  %v526_v1 = vpop.f32.mrb[7].mxu0 }
  0xf6   : > { %883 = vst.msk [vmem:[%s1418_s15] sm:$0xf] %vm882_vm2, %v1086_v54  ;;  %v1087_v2 = vpack.c.bf16 %v803_v55, %v803_v55  ;;  %v774_v3 = vmul.f32 %v1400_v22, %v524_v57  ;;  %v527_v4 = vadd.f32 %v1393_v19, %v526_v1  ;;  %v719_v5 = vpop.f32.mrb[7].mxu1  ;;  %v728_v8 = vadd.f32 %v1150_v0, %v1398_v20 }
  0xf7   : > { %886 = vst.msk [vmem:[%s1418_s15 + $0xc] sm:$0xf] %vm882_vm2, %v1089_v60  ;;  %v792_v6 = vadd.f32 %v776_v61, %v725_v56  ;;  %v777_v7 = vmul.f32 %v1400_v22, %v535_v63  ;;  %v720_v11 = vadd.f32 %v1398_v20, %v719_v5 }
  0xf8   : > { %884 = vst.msk [vmem:[%s1418_s15 + $0x4] sm:$0xf] %vm882_vm2, %v1087_v2  ;;  %v790_v9 = vadd.f32 %v774_v3, %v717_v62  ;;  %v775_v10 = vmul.f32 %v1400_v22, %v527_v4 }
  0xf9   : > { %v808_v12 = vmax.f32 %v792_v6, 0.0  ;;  %v793_v13 = vadd.f32 %v777_v7, %v728_v8 }
  0xfa   : > { %v806_v14 = vmax.f32 %v790_v9, 0.0  ;;  %v791_v15 = vadd.f32 %v775_v10, %v720_v11  ;;  %v1135_v16 = vpop.f32.mrb[8].mxu0 }
  0xfb   : > { %v1092_v17 = vpack.c.bf16 %v808_v12, %v808_v12  ;;  %v809_v18 = vmax.f32 %v793_v13, 0.0  ;;  %v548_v21 = vadd.f32 %v1135_v16, %v1393_v19  ;;  %v1153_v23 = vpop.f32.mrb[8].mxu1  ;;  %v539_v24 = vpop.f32.mrb[9].mxu0 }
  0xfc   : > { %v1090_v25 = vpack.c.bf16 %v806_v14, %v806_v14  ;;  %v807_v26 = vmax.f32 %v791_v15, 0.0  ;;  %v741_v27 = vadd.f32 %v1153_v23, %v1398_v20  ;;  %v540_v28 = vadd.f32 %v1393_v19, %v539_v24  ;;  %v732_v29 = vpop.f32.mrb[9].mxu1  ;;  %v1136_v30 = vpop.f32.mrb[10].mxu0 }
  0xfd   : > { %889 = vst.msk [vmem:[%s1418_s15 + $0x18] sm:$0xf] %vm882_vm2, %v1092_v17  ;;  %v1093_v31 = vpack.c.bf16 %v809_v18, %v809_v18  ;;  %v780_v32 = vmul.f32 %v1400_v22, %v548_v21  ;;  %v733_v33 = vadd.f32 %v1398_v20, %v732_v29  ;;  %v551_v34 = vadd.f32 %v1136_v30, %v1393_v19  ;;  %v1154_v35 = vpop.f32.mrb[10].mxu1  ;;  %v542_v36 = vpop.f32.mrb[11].mxu0 }
  0xfe   : > { %887 = vst.msk [vmem:[%s1418_s15 + $0x10] sm:$0xf] %vm882_vm2, %v1090_v25  ;;  %v1091_v37 = vpack.c.bf16 %v807_v26, %v807_v26  ;;  %v778_v38 = vmul.f32 %v1400_v22, %v540_v28  ;;  %v543_v39 = vadd.f32 %v1393_v19, %v542_v36  ;;  %v735_v40 = vpop.f32.mrb[11].mxu1  ;;  %v744_v43 = vadd.f32 %v1154_v35, %v1398_v20 }
  0xff   : > { %890 = vst.msk [vmem:[%s1418_s15 + $0x1c] sm:$0xf] %vm882_vm2, %v1093_v31  ;;  %v796_v41 = vadd.f32 %v780_v32, %v741_v27  ;;  %v781_v42 = vmul.f32 %v1400_v22, %v551_v34  ;;  %v736_v46 = vadd.f32 %v1398_v20, %v735_v40 }
 0x100   : > { %888 = vst.msk [vmem:[%s1418_s15 + $0x14] sm:$0xf] %vm882_vm2, %v1091_v37  ;;  %v794_v44 = vadd.f32 %v778_v38, %v733_v33  ;;  %v779_v45 = vmul.f32 %v1400_v22, %v543_v39 }
 0x101   : > { %v812_v47 = vmax.f32 %v796_v41, 0.0  ;;  %v797_v48 = vadd.f32 %v781_v42, %v744_v43 }
 0x102   : > { %v810_v49 = vmax.f32 %v794_v44, 0.0  ;;  %v795_v50 = vadd.f32 %v779_v45, %v736_v46  ;;  %v1139_v51 = vpop.f32.mrb[12].mxu0 }
 0x103   : > { %v1096_v52 = vpack.c.bf16 %v812_v47, %v812_v47  ;;  %v813_v53 = vmax.f32 %v797_v48, 0.0  ;;  %v564_v54 = vadd.f32 %v1139_v51, %v1393_v19  ;;  %v1157_v55 = vpop.f32.mrb[12].mxu1  ;;  %v555_v56 = vpop.f32.mrb[13].mxu0 }
 0x104   : > { %v1094_v57 = vpack.c.bf16 %v810_v49, %v810_v49  ;;  %v811_v58 = vmax.f32 %v795_v50, 0.0  ;;  %v757_v59 = vadd.f32 %v1157_v55, %v1398_v20  ;;  %v556_v60 = vadd.f32 %v1393_v19, %v555_v56  ;;  %v748_v61 = vpop.f32.mrb[13].mxu1  ;;  %v1140_v62 = vpop.f32.mrb[14].mxu0 }
 0x105   : > { %893 = vst.msk [vmem:[%s1418_s15 + $0x28] sm:$0xf] %vm882_vm2, %v1096_v52  ;;  %v1097_v63 = vpack.c.bf16 %v813_v53, %v813_v53  ;;  %v784_v0 = vmul.f32 %v1400_v22, %v564_v54  ;;  %v749_v1 = vadd.f32 %v1398_v20, %v748_v61  ;;  %v567_v2 = vadd.f32 %v1140_v62, %v1393_v19  ;;  %v1158_v3 = vpop.f32.mrb[14].mxu1  ;;  %v558_v4 = vpop.f32.mrb[15].mxu0 }
 0x106   : > { %891 = vst.msk [vmem:[%s1418_s15 + $0x20] sm:$0xf] %vm882_vm2, %v1094_v57  ;;  %v1095_v5 = vpack.c.bf16 %v811_v58, %v811_v58  ;;  %v782_v6 = vmul.f32 %v1400_v22, %v556_v60  ;;  %v559_v7 = vadd.f32 %v1393_v19, %v558_v4  ;;  %v751_v8 = vpop.f32.mrb[15].mxu1  ;;  %v760_v11 = vadd.f32 %v1158_v3, %v1398_v20 }
 0x107   : > { %894 = vst.msk [vmem:[%s1418_s15 + $0x2c] sm:$0xf] %vm882_vm2, %v1097_v63  ;;  %v800_v9 = vadd.f32 %v784_v0, %v757_v59  ;;  %v785_v10 = vmul.f32 %v1400_v22, %v567_v2  ;;  %v752_v14 = vadd.f32 %v1398_v20, %v751_v8 }
 0x108   : > { %892 = vst.msk [vmem:[%s1418_s15 + $0x24] sm:$0xf] %vm882_vm2, %v1095_v5  ;;  %v798_v12 = vadd.f32 %v782_v6, %v749_v1  ;;  %v783_v13 = vmul.f32 %v1400_v22, %v559_v7 }
 0x109   : > { %v816_v19 = vmax.f32 %v800_v9, 0.0  ;;  %v801_v15 = vadd.f32 %v785_v10, %v760_v11 }
 0x10a   : > { %v814_v16 = vmax.f32 %v798_v12, 0.0  ;;  %v799_v17 = vadd.f32 %v783_v13, %v752_v14 }
 0x10b   : > { %v1100_v18 = vpack.c.bf16 %v816_v19, %v816_v19  ;;  %v817_v21 = vmax.f32 %v801_v15, 0.0 }
 0x10c   : > { %v1098_v23 = vpack.c.bf16 %v814_v16, %v814_v16  ;;  %v815_v24 = vmax.f32 %v799_v17, 0.0 }
 0x10d   : > { %897 = vst.msk [vmem:[%s1418_s15 + $0x38] sm:$0xf] %vm882_vm2, %v1100_v18  ;;  %v1101_v25 = vpack.c.bf16 %v817_v21, %v817_v21 }
 0x10e   : > { %895 = vst.msk [vmem:[%s1418_s15 + $0x30] sm:$0xf] %vm882_vm2, %v1098_v23  ;;  %v1099_v26 = vpack.c.bf16 %v815_v24, %v815_v24 }
 0x10f   : > { %898 = vst.msk [vmem:[%s1418_s15 + $0x3c] sm:$0xf] %vm882_vm2, %v1101_v25 }
 0x110   : > { %896 = vst.msk [vmem:[%s1418_s15 + $0x34] sm:$0xf] %vm882_vm2, %v1099_v26 }
 0x111 PF: > { %s17_s28 = sadd.s32 1, %s1256_s28   ;;  %s1511_s24 = smov %s1248_s26 }
 0x112   : > { %p14_p7 = scmp.ge.s32.totalorder %s17_s28, 6   ;;  %s1512_s25 = smov %s1252_s27 }
 0x113   : > { %s1513_s26 = smov %s1516_s29  ;;  %s1514_s27 = smov %s1520_s30 }
 0x114   :  { %16 = sbr.rel (!%p14_p7) target bundleno = 3 (0x3), region = 84 }

</bundles_post_ra>
